<compile_context>
chip_gen: v6e
topology: v6e:2x2x1
jax: 0.10.0
libtpu: 0.0.40
codegen_flags: <defaults>
</compile_context>

<pallas_src>
import numpy as np
import jax
import jax.numpy as jnp
from jax import lax
from jax.experimental import pallas as pl
from jax.experimental.pallas import tpu as pltpu


# ---------------------------------------------------------------------------
# Fused kernel (single grid step): embedding + n-gram convs + max + tanh + LSTM
# Row layout of activations: batch-major flattened rows, r = b*L + t.
# ---------------------------------------------------------------------------
def _make_kernel(B, L, C):
    f32 = jnp.float32

    def kernel(wr_ref, m_ref, we_ref, be_ref, sprev_ref, snext_ref,
               wcur_ref, wpv_ref, wnx_ref, ball_ref, ptm_ref,
               w0x_ref, w0h_ref, b0_ref, w1x_ref, w1h_ref, b1_ref,
               emb_ref, phrase_ref, q_ref):
        # --- nn.Linear embedding; mask reproduces rnn.pad_sequence zero rows ---
        emb = (jnp.dot(wr_ref[...], we_ref[...], preferred_element_type=f32)
               + be_ref[...]) * m_ref[...]                            # (BL, E)
        emb_ref[...] = emb

        # --- emb[t-1] / emb[t+1] via block-diagonal shift matmuls; the shift
        #     matrices zero the per-sequence boundary rows themselves. ---
        emb_pv = jnp.dot(sprev_ref[...], emb, preferred_element_type=f32)
        emb_nx = jnp.dot(snext_ref[...], emb, preferred_element_type=f32)

        # --- all three n-gram convs as three wide (E, 3C) matmuls ---
        p = (jnp.dot(emb, wcur_ref[...], preferred_element_type=f32)
             + jnp.dot(emb_pv, wpv_ref[...], preferred_element_type=f32)
             + jnp.dot(emb_nx, wnx_ref[...], preferred_element_type=f32)
             + ball_ref[...])                                         # (BL, 3C)
        uni = p[:, 0:C]
        big = p[:, C:2 * C]
        tri = p[:, 2 * C:3 * C]
        phrase = jnp.tanh(jnp.maximum(jnp.maximum(uni, big), tri))    # (BL, C)
        phrase_ref[...] = phrase

        # --- 2-layer LSTM, torch gate order (i, f, g, o) ---
        # Reorder phrase to time-major rows (r = t*B + b) with one permutation
        # matmul, then hoist the layer-0 input projection out of the recurrence.
        phrase_tm = jnp.dot(ptm_ref[...], phrase, preferred_element_type=f32)
        x0 = (jnp.dot(phrase_tm, w0x_ref[...], preferred_element_type=f32)
              + b0_ref[...])                                          # (BL, 4C)

        def cell(gates, c_prev):                                      # gates: (B, 4C)
            i = jax.nn.sigmoid(gates[:, 0:C])
            f = jax.nn.sigmoid(gates[:, C:2 * C])
            g = jnp.tanh(gates[:, 2 * C:3 * C])
            o = jax.nn.sigmoid(gates[:, 3 * C:4 * C])
            c_new = f * c_prev + i * g
            return o * jnp.tanh(c_new), c_new

        zeros = jnp.zeros((B, C), f32)
        h1, c1, h2, c2 = zeros, zeros, zeros, zeros
        for t in range(L):                 # static unroll: L is fixed and tiny
            x0_t = x0[t * B:(t + 1) * B, :]                           # (B, 4C)
            g0 = x0_t + jnp.dot(h1, w0h_ref[...], preferred_element_type=f32)
            h1, c1 = cell(g0, c1)
            g1 = (jnp.dot(h1, w1x_ref[...], preferred_element_type=f32)
                  + jnp.dot(h2, w1h_ref[...], preferred_element_type=f32)
                  + b1_ref[...])
            h2, c2 = cell(g1, c2)
            for b in range(B):             # scatter back to batch-major rows
                q_ref[pl.ds(b * L + t, 1), :] = h2[b:b + 1, :]

    return kernel


def language_embedding_forward(word_rep, mask, We, be, Wu, bu, Wb, bb, Wt, bt,
                               wih0, whh0, bih0, bhh0, wih1, whh1, bih1, bhh1):
    """Fused forward pass. Weights are given in torch layout (see __main__)."""
    B, L, Q = word_rep.shape
    E = We.shape[1]
    C = Wu.shape[0]
    BL = B * L
    f32 = jnp.float32

    # flattened batch-major activations (row r = b*L + t)
    wr2 = word_rep.reshape(BL, Q).astype(f32)
    m2 = mask.reshape(BL, 1).astype(f32)

    # block-diagonal time-shift matrices (zero at per-sequence boundaries)
    sprev = jnp.asarray(np.kron(np.eye(B), np.eye(L, L, -1)), f32)    # picks emb[t-1]
    snext = jnp.asarray(np.kron(np.eye(B), np.eye(L, L, 1)), f32)     # picks emb[t+1]
    # batch-major -> time-major permutation (row t*B+b takes row b*L+t)
    ptm_np = np.zeros((BL, BL), np.float32)
    for b in range(B):
        for t in range(L):
            ptm_np[t * B + b, b * L + t] = 1.0
    ptm = jnp.asarray(ptm_np)

    # Conv1d weights packed into three (E, 3C) banks, columns = [uni | big | tri]
    zEC = jnp.zeros((E, C), f32)
    Wcur = jnp.concatenate([Wu[:, :, 0].T, Wb[:, :, 0].T, Wt[:, :, 1].T], axis=1)
    Wpv = jnp.concatenate([zEC, zEC, Wt[:, :, 0].T], axis=1)
    Wnx = jnp.concatenate([zEC, Wb[:, :, 1].T, Wt[:, :, 2].T], axis=1)
    ball = jnp.concatenate([bu, bb, bt])[None, :]                     # (1, 3C)

    # LSTM weights: all 4 gates fused along N (torch order i|f|g|o)
    W0x, W0h = wih0.T, whh0.T                                         # (C, 4C)
    b0 = (bih0 + bhh0)[None, :]
    W1x, W1h = wih1.T, whh1.T
    b1 = (bih1 + bhh1)[None, :]

    def full(shape):
        return pl.BlockSpec(shape, lambda i: (0,) * len(shape))

    grid_spec = pltpu.PrefetchScalarGridSpec(
        num_scalar_prefetch=0,
        grid=(1,),
        in_specs=[
            full((BL, Q)), full((BL, 1)),
            full((Q, E)), full((1, E)),
            full((BL, BL)), full((BL, BL)),
            full((E, 3 * C)), full((E, 3 * C)), full((E, 3 * C)), full((1, 3 * C)),
            full((BL, BL)),
            full((C, 4 * C)), full((C, 4 * C)), full((1, 4 * C)),
            full((C, 4 * C)), full((C, 4 * C)), full((1, 4 * C)),
        ],
        out_specs=[full((BL, E)), full((BL, C)), full((BL, C))],
    )

    emb2, phrase2, q2 = pl.pallas_call(
        _make_kernel(B, L, C),
        out_shape=(jax.ShapeDtypeStruct((BL, E), f32),
                   jax.ShapeDtypeStruct((BL, C), f32),
                   jax.ShapeDtypeStruct((BL, C), f32)),
        grid_spec=grid_spec,
        compiler_params=pltpu.CompilerParams(
            dimension_semantics=("arbitrary",)),
    )(wr2, m2, We, be[None, :], sprev, snext, Wcur, Wpv, Wnx, ball, ptm,
      W0x, W0h, b0, W1x, W1h, b1)

    # metadata-only reshapes back to the module's (B, L, *) outputs
    return (emb2.reshape(B, L, E),
            phrase2.reshape(B, L, C),
            q2.reshape(B, L, C))


# ---------------------------------------------------------------------------
# Plain-JAX reference (mirrors the PyTorch forward, weights in torch layout)
# ---------------------------------------------------------------------------
def reference(word_rep, mask, We, be, Wu, bu, Wb, bb, Wt, bt,
              wih0, whh0, bih0, bhh0, wih1, whh1, bih1, bhh1):
    B, L, Q = word_rep.shape
    E = We.shape[1]
    emb = (word_rep @ We + be) * mask[:, :, None]              # (B, L, E)
    zrow = jnp.zeros((B, 1, E), jnp.float32)
    emb_next = jnp.concatenate([emb[:, 1:], zrow], axis=1)
    emb_prev = jnp.concatenate([zrow, emb[:, :-1]], axis=1)
    uni = emb @ Wu[:, :, 0].T + bu
    big = emb @ Wb[:, :, 0].T + emb_next @ Wb[:, :, 1].T + bb
    tri = emb_prev @ Wt[:, :, 0].T + emb @ Wt[:, :, 1].T + emb_next @ Wt[:, :, 2].T + bt
    phrase = jnp.tanh(jnp.maximum(jnp.maximum(uni, big), tri))

    C = Wu.shape[0]

    def cell(x_t, h, c, wih, whh, b):
        gates = x_t @ wih.T + h @ whh.T + b
        i, f, g, o = jnp.split(gates, 4, axis=-1)
        c_new = jax.nn.sigmoid(f) * c + jax.nn.sigmoid(i) * jnp.tanh(g)
        h_new = jax.nn.sigmoid(o) * jnp.tanh(c_new)
        return h_new, c_new

    def step(carry, x_t):
        h1, c1, h2, c2 = carry
        h1, c1 = cell(x_t, h1, c1, wih0, whh0, bih0 + bhh0)
        h2, c2 = cell(h1, h2, c2, wih1, whh1, bih1 + bhh1)
        return (h1, c1, h2, c2), h2

    init = tuple(jnp.zeros((B, C), jnp.float32) for _ in range(4))
    _, q_tm = lax.scan(step, init, jnp.transpose(phrase, (1, 0, 2)))
    return emb, phrase, jnp.transpose(q_tm, (1, 0, 2))


if __name__ == "__main__":
    # small shapes: num_question=12, conv_size=16, embedding_size=32, max_len=8, batch=2
    B, L, Q, E, C = 2, 8, 12, 32, 16
    key = jax.random.PRNGKey(0)
    ks = jax.random.split(key, 20)

    # Ragged word_rep (list of (len_i, Q) tensors in torch) -> padded (B, L, Q) + mask.
    # TODO(synk): rnn.pad_sequence over a Python list of ragged tensors has no direct
    #             Pallas analogue; padding/masking is done here as JAX-side glue.
    lengths = jnp.array([8, 5], dtype=jnp.int32)
    mask = (jnp.arange(L)[None, :] < lengths[:, None]).astype(jnp.float32)   # (B, L)
    word_rep = jax.random.normal(ks[0], (B, L, Q), jnp.float32) * mask[:, :, None]

    # --- deterministic synthetic parameters (shapes follow the torch module) ---
    We = jax.random.normal(ks[1], (Q, E), jnp.float32) * 0.1     # embedding.weight.T
    be = jax.random.normal(ks[2], (E,), jnp.float32) * 0.1
    Wu = jax.random.normal(ks[3], (C, E, 1), jnp.float32) * 0.1  # Conv1d(E,C,1)
    bu = jax.random.normal(ks[4], (C,), jnp.float32) * 0.1
    Wb = jax.random.normal(ks[5], (C, E, 2), jnp.float32) * 0.1  # Conv1d(E,C,2,pad=1)
    bb = jax.random.normal(ks[6], (C,), jnp.float32) * 0.1
    Wt = jax.random.normal(ks[7], (C, E, 3), jnp.float32) * 0.1  # Conv1d(E,C,3,pad=1)
    bt = jax.random.normal(ks[8], (C,), jnp.float32) * 0.1
    # LSTM(input=C, hidden=C, num_layers=2); torch gate order (i, f, g, o)
    wih0 = jax.random.normal(ks[9], (4 * C, C), jnp.float32) * 0.1
    whh0 = jax.random.normal(ks[10], (4 * C, C), jnp.float32) * 0.1
    bih0 = jax.random.normal(ks[11], (4 * C,), jnp.float32) * 0.1
    bhh0 = jax.random.normal(ks[12], (4 * C,), jnp.float32) * 0.1
    wih1 = jax.random.normal(ks[13], (4 * C, C), jnp.float32) * 0.1
    whh1 = jax.random.normal(ks[14], (4 * C, C), jnp.float32) * 0.1
    bih1 = jax.random.normal(ks[15], (4 * C,), jnp.float32) * 0.1
    bhh1 = jax.random.normal(ks[16], (4 * C,), jnp.float32) * 0.1

    # --- run the fused Pallas kernel ---
    outs = language_embedding_forward(
        word_rep, mask, We, be, Wu, bu, Wb, bb, Wt, bt,
        wih0, whh0, bih0, bhh0, wih1, whh1, bih1, bhh1)
    outs = jax.block_until_ready(outs)

    # --- cross-check against plain-JAX reference of the torch forward ---
    refs = reference(word_rep, mask, We, be, Wu, bu, Wb, bb, Wt, bt,
                     wih0, whh0, bih0, bhh0, wih1, whh1, bih1, bhh1)
    for got, want in zip(outs, refs):
        if not np.allclose(np.asarray(got), np.asarray(want), atol=1e-3, rtol=1e-3):
            raise SystemExit("MISMATCH")

    print("KERNEL_OK")
</pallas_src>

<mosaic_0001>
module attributes {stable_mosaic.version = 11 : i64} {
  func.func @kernel(%arg0: i32, %arg1: memref<16x12xf32, #tpu.memory_space<vmem>>, %arg2: memref<16x1xf32, #tpu.memory_space<vmem>>, %arg3: memref<12x32xf32, #tpu.memory_space<vmem>>, %arg4: memref<1x32xf32, #tpu.memory_space<vmem>>, %arg5: memref<16x16xf32, #tpu.memory_space<vmem>>, %arg6: memref<16x16xf32, #tpu.memory_space<vmem>>, %arg7: memref<32x48xf32, #tpu.memory_space<vmem>>, %arg8: memref<32x48xf32, #tpu.memory_space<vmem>>, %arg9: memref<32x48xf32, #tpu.memory_space<vmem>>, %arg10: memref<1x48xf32, #tpu.memory_space<vmem>>, %arg11: memref<16x16xf32, #tpu.memory_space<vmem>>, %arg12: memref<16x64xf32, #tpu.memory_space<vmem>>, %arg13: memref<16x64xf32, #tpu.memory_space<vmem>>, %arg14: memref<1x64xf32, #tpu.memory_space<vmem>>, %arg15: memref<16x64xf32, #tpu.memory_space<vmem>>, %arg16: memref<16x64xf32, #tpu.memory_space<vmem>>, %arg17: memref<1x64xf32, #tpu.memory_space<vmem>>, %arg18: memref<16x32xf32, #tpu.memory_space<vmem>>, %arg19: memref<16x16xf32, #tpu.memory_space<vmem>>, %arg20: memref<16x16xf32, #tpu.memory_space<vmem>>) attributes {dimension_semantics = [#tpu.dimension_semantics<arbitrary>], iteration_bounds = array<i64: 1>, scalar_prefetch = 0 : i64, scratch_operands = 0 : i64, tpu.core_type = #tpu.core_type<tc>, window_params = [{pipeline_mode = #tpu.pipeline_mode<synchronous>, transform_indices = @transform_0, window_bounds = array<i64: 16, 12>}, {pipeline_mode = #tpu.pipeline_mode<synchronous>, transform_indices = @transform_1, window_bounds = array<i64: 16, 1>}, {pipeline_mode = #tpu.pipeline_mode<synchronous>, transform_indices = @transform_2, window_bounds = array<i64: 12, 32>}, {pipeline_mode = #tpu.pipeline_mode<synchronous>, transform_indices = @transform_3, window_bounds = array<i64: 1, 32>}, {pipeline_mode = #tpu.pipeline_mode<synchronous>, transform_indices = @transform_4, window_bounds = array<i64: 16, 16>}, {pipeline_mode = #tpu.pipeline_mode<synchronous>, transform_indices = @transform_5, window_bounds = array<i64: 16, 16>}, {pipeline_mode = #tpu.pipeline_mode<synchronous>, transform_indices = @transform_6, window_bounds = array<i64: 32, 48>}, {pipeline_mode = #tpu.pipeline_mode<synchronous>, transform_indices = @transform_7, window_bounds = array<i64: 32, 48>}, {pipeline_mode = #tpu.pipeline_mode<synchronous>, transform_indices = @transform_8, window_bounds = array<i64: 32, 48>}, {pipeline_mode = #tpu.pipeline_mode<synchronous>, transform_indices = @transform_9, window_bounds = array<i64: 1, 48>}, {pipeline_mode = #tpu.pipeline_mode<synchronous>, transform_indices = @transform_10, window_bounds = array<i64: 16, 16>}, {pipeline_mode = #tpu.pipeline_mode<synchronous>, transform_indices = @transform_11, window_bounds = array<i64: 16, 64>}, {pipeline_mode = #tpu.pipeline_mode<synchronous>, transform_indices = @transform_12, window_bounds = array<i64: 16, 64>}, {pipeline_mode = #tpu.pipeline_mode<synchronous>, transform_indices = @transform_13, window_bounds = array<i64: 1, 64>}, {pipeline_mode = #tpu.pipeline_mode<synchronous>, transform_indices = @transform_14, window_bounds = array<i64: 16, 64>}, {pipeline_mode = #tpu.pipeline_mode<synchronous>, transform_indices = @transform_15, window_bounds = array<i64: 16, 64>}, {pipeline_mode = #tpu.pipeline_mode<synchronous>, transform_indices = @transform_16, window_bounds = array<i64: 1, 64>}, {pipeline_mode = #tpu.pipeline_mode<synchronous>, transform_indices = @transform_17, window_bounds = array<i64: 16, 32>}, {pipeline_mode = #tpu.pipeline_mode<synchronous>, transform_indices = @transform_18, window_bounds = array<i64: 16, 16>}, {pipeline_mode = #tpu.pipeline_mode<synchronous>, transform_indices = @transform_19, window_bounds = array<i64: 16, 16>}]} {
    %c0 = arith.constant 0 : index
    %c0_0 = arith.constant 0 : index
    %0 = vector.load %arg1[%c0, %c0_0] : memref<16x12xf32, #tpu.memory_space<vmem>>, vector<16x12xf32>
    %c0_1 = arith.constant 0 : index
    %c0_2 = arith.constant 0 : index
    %1 = vector.load %arg3[%c0_1, %c0_2] : memref<12x32xf32, #tpu.memory_space<vmem>>, vector<12x32xf32>
    %cst = arith.constant dense<0.000000e+00> : vector<16x32xf32>
    %2 = tpu.matmul %0, %1, %cst {dimension_numbers = #tpu.dot_dimension_numbers<[1], [0], [0], [1], [0, 0, 1, 1], [], []>} : vector<16x12xf32>, vector<12x32xf32>, vector<16x32xf32> -> vector<16x32xf32>
    %c0_3 = arith.constant 0 : index
    %c0_4 = arith.constant 0 : index
    %3 = vector.load %arg4[%c0_3, %c0_4] : memref<1x32xf32, #tpu.memory_space<vmem>>, vector<1x32xf32>
    %4 = vector.broadcast %3 : vector<1x32xf32> to vector<16x32xf32>
    %5 = arith.addf %2, %4 : vector<16x32xf32>
    %c0_5 = arith.constant 0 : index
    %c0_6 = arith.constant 0 : index
    %6 = vector.load %arg2[%c0_5, %c0_6] : memref<16x1xf32, #tpu.memory_space<vmem>>, vector<16x1xf32>
    %7 = vector.broadcast %6 : vector<16x1xf32> to vector<16x32xf32>
    %8 = arith.mulf %5, %7 : vector<16x32xf32>
    %c0_7 = arith.constant 0 : index
    %c0_8 = arith.constant 0 : index
    %9 = vector.load %arg18[%c0_7, %c0_8] : memref<16x32xf32, #tpu.memory_space<vmem>>, vector<16x32xf32>
    tpu.vector_store %arg18[%c0_7, %c0_8], %8 {strides = array<i32>} : memref<16x32xf32, #tpu.memory_space<vmem>>, vector<16x32xf32>,
    %c0_9 = arith.constant 0 : index
    %c0_10 = arith.constant 0 : index
    %10 = vector.load %arg5[%c0_9, %c0_10] : memref<16x16xf32, #tpu.memory_space<vmem>>, vector<16x16xf32>
    %cst_11 = arith.constant dense<0.000000e+00> : vector<16x32xf32>
    %11 = tpu.matmul %10, %8, %cst_11 {dimension_numbers = #tpu.dot_dimension_numbers<[1], [0], [0], [1], [0, 0, 1, 1], [], []>} : vector<16x16xf32>, vector<16x32xf32>, vector<16x32xf32> -> vector<16x32xf32>
    %c0_12 = arith.constant 0 : index
    %c0_13 = arith.constant 0 : index
    %12 = vector.load %arg6[%c0_12, %c0_13] : memref<16x16xf32, #tpu.memory_space<vmem>>, vector<16x16xf32>
    %cst_14 = arith.constant dense<0.000000e+00> : vector<16x32xf32>
    %13 = tpu.matmul %12, %8, %cst_14 {dimension_numbers = #tpu.dot_dimension_numbers<[1], [0], [0], [1], [0, 0, 1, 1], [], []>} : vector<16x16xf32>, vector<16x32xf32>, vector<16x32xf32> -> vector<16x32xf32>
    %c0_15 = arith.constant 0 : index
    %c0_16 = arith.constant 0 : index
    %14 = vector.load %arg7[%c0_15, %c0_16] : memref<32x48xf32, #tpu.memory_space<vmem>>, vector<32x48xf32>
    %cst_17 = arith.constant dense<0.000000e+00> : vector<16x48xf32>
    %15 = tpu.matmul %8, %14, %cst_17 {dimension_numbers = #tpu.dot_dimension_numbers<[1], [0], [0], [1], [0, 0, 1, 1], [], []>} : vector<16x32xf32>, vector<32x48xf32>, vector<16x48xf32> -> vector<16x48xf32>
    %c0_18 = arith.constant 0 : index
    %c0_19 = arith.constant 0 : index
    %16 = vector.load %arg8[%c0_18, %c0_19] : memref<32x48xf32, #tpu.memory_space<vmem>>, vector<32x48xf32>
    %cst_20 = arith.constant dense<0.000000e+00> : vector<16x48xf32>
    %17 = tpu.matmul %11, %16, %cst_20 {dimension_numbers = #tpu.dot_dimension_numbers<[1], [0], [0], [1], [0, 0, 1, 1], [], []>} : vector<16x32xf32>, vector<32x48xf32>, vector<16x48xf32> -> vector<16x48xf32>
    %18 = arith.addf %15, %17 : vector<16x48xf32>
    %c0_21 = arith.constant 0 : index
    %c0_22 = arith.constant 0 : index
    %19 = vector.load %arg9[%c0_21, %c0_22] : memref<32x48xf32, #tpu.memory_space<vmem>>, vector<32x48xf32>
    %cst_23 = arith.constant dense<0.000000e+00> : vector<16x48xf32>
    %20 = tpu.matmul %13, %19, %cst_23 {dimension_numbers = #tpu.dot_dimension_numbers<[1], [0], [0], [1], [0, 0, 1, 1], [], []>} : vector<16x32xf32>, vector<32x48xf32>, vector<16x48xf32> -> vector<16x48xf32>
    %21 = arith.addf %18, %20 : vector<16x48xf32>
    %c0_24 = arith.constant 0 : index
    %c0_25 = arith.constant 0 : index
    %22 = vector.load %arg10[%c0_24, %c0_25] : memref<1x48xf32, #tpu.memory_space<vmem>>, vector<1x48xf32>
    %23 = vector.broadcast %22 : vector<1x48xf32> to vector<16x48xf32>
    %24 = arith.addf %21, %23 : vector<16x48xf32>
    %25 = vector.extract_strided_slice %24 {offsets = [0, 0], sizes = [16, 16], strides = [1, 1]} : vector<16x48xf32> to vector<16x16xf32>
    %26 = vector.extract_strided_slice %24 {offsets = [0, 16], sizes = [16, 16], strides = [1, 1]} : vector<16x48xf32> to vector<16x16xf32>
    %27 = vector.extract_strided_slice %24 {offsets = [0, 32], sizes = [16, 16], strides = [1, 1]} : vector<16x48xf32> to vector<16x16xf32>
    %28 = arith.maximumf %25, %26 : vector<16x16xf32>
    %29 = arith.maximumf %28, %27 : vector<16x16xf32>
    %30 = math.tanh %29 : vector<16x16xf32>
    %c0_26 = arith.constant 0 : index
    %c0_27 = arith.constant 0 : index
    %31 = vector.load %arg19[%c0_26, %c0_27] : memref<16x16xf32, #tpu.memory_space<vmem>>, vector<16x16xf32>
    tpu.vector_store %arg19[%c0_26, %c0_27], %30 {strides = array<i32>} : memref<16x16xf32, #tpu.memory_space<vmem>>, vector<16x16xf32>,
    %c0_28 = arith.constant 0 : index
    %c0_29 = arith.constant 0 : index
    %32 = vector.load %arg11[%c0_28, %c0_29] : memref<16x16xf32, #tpu.memory_space<vmem>>, vector<16x16xf32>
    %cst_30 = arith.constant dense<0.000000e+00> : vector<16x16xf32>
    %33 = tpu.matmul %32, %30, %cst_30 {dimension_numbers = #tpu.dot_dimension_numbers<[1], [0], [0], [1], [0, 0, 1, 1], [], []>} : vector<16x16xf32>, vector<16x16xf32>, vector<16x16xf32> -> vector<16x16xf32>
    %c0_31 = arith.constant 0 : index
    %c0_32 = arith.constant 0 : index
    %34 = vector.load %arg12[%c0_31, %c0_32] : memref<16x64xf32, #tpu.memory_space<vmem>>, vector<16x64xf32>
    %cst_33 = arith.constant dense<0.000000e+00> : vector<16x64xf32>
    %35 = tpu.matmul %33, %34, %cst_33 {dimension_numbers = #tpu.dot_dimension_numbers<[1], [0], [0], [1], [0, 0, 1, 1], [], []>} : vector<16x16xf32>, vector<16x64xf32>, vector<16x64xf32> -> vector<16x64xf32>
    %c0_34 = arith.constant 0 : index
    %c0_35 = arith.constant 0 : index
    %36 = vector.load %arg14[%c0_34, %c0_35] : memref<1x64xf32, #tpu.memory_space<vmem>>, vector<1x64xf32>
    %37 = vector.broadcast %36 : vector<1x64xf32> to vector<16x64xf32>
    %38 = arith.addf %35, %37 : vector<16x64xf32>
    %cst_36 = arith.constant 0.000000e+00 : f32
    %39 = vector.broadcast %cst_36 : f32 to vector<2x16xf32>
    %40 = vector.extract_strided_slice %38 {offsets = [0, 0], sizes = [2, 64], strides = [1, 1]} : vector<16x64xf32> to vector<2x64xf32>
    %c0_37 = arith.constant 0 : index
    %c0_38 = arith.constant 0 : index
    %41 = vector.load %arg13[%c0_37, %c0_38] : memref<16x64xf32, #tpu.memory_space<vmem>>, vector<16x64xf32>
    %cst_39 = arith.constant dense<0.000000e+00> : vector<2x64xf32>
    %42 = tpu.matmul %39, %41, %cst_39 {dimension_numbers = #tpu.dot_dimension_numbers<[1], [0], [0], [1], [0, 0, 1, 1], [], []>} : vector<2x16xf32>, vector<16x64xf32>, vector<2x64xf32> -> vector<2x64xf32>
    %43 = arith.addf %40, %42 : vector<2x64xf32>
    %44 = vector.extract_strided_slice %43 {offsets = [0, 0], sizes = [2, 16], strides = [1, 1]} : vector<2x64xf32> to vector<2x16xf32>
    %45 = arith.negf %44 : vector<2x16xf32>
    %46 = math.exp %45 : vector<2x16xf32>
    %cst_40 = arith.constant 1.000000e+00 : f32
    %47 = vector.broadcast %cst_40 : f32 to vector<2x16xf32>
    %48 = arith.addf %47, %46 : vector<2x16xf32>
    %49 = arith.divf %47, %48 : vector<2x16xf32>
    %50 = vector.extract_strided_slice %43 {offsets = [0, 16], sizes = [2, 16], strides = [1, 1]} : vector<2x64xf32> to vector<2x16xf32>
    %51 = arith.negf %50 : vector<2x16xf32>
    %52 = math.exp %51 : vector<2x16xf32>
    %cst_41 = arith.constant 1.000000e+00 : f32
    %53 = vector.broadcast %cst_41 : f32 to vector<2x16xf32>
    %54 = arith.addf %53, %52 : vector<2x16xf32>
    %55 = arith.divf %53, %54 : vector<2x16xf32>
    %56 = vector.extract_strided_slice %43 {offsets = [0, 32], sizes = [2, 16], strides = [1, 1]} : vector<2x64xf32> to vector<2x16xf32>
    %57 = math.tanh %56 : vector<2x16xf32>
    %58 = vector.extract_strided_slice %43 {offsets = [0, 48], sizes = [2, 16], strides = [1, 1]} : vector<2x64xf32> to vector<2x16xf32>
    %59 = arith.negf %58 : vector<2x16xf32>
    %60 = math.exp %59 : vector<2x16xf32>
    %cst_42 = arith.constant 1.000000e+00 : f32
    %61 = vector.broadcast %cst_42 : f32 to vector<2x16xf32>
    %62 = arith.addf %61, %60 : vector<2x16xf32>
    %63 = arith.divf %61, %62 : vector<2x16xf32>
    %64 = arith.mulf %55, %39 : vector<2x16xf32>
    %65 = arith.mulf %49, %57 : vector<2x16xf32>
    %66 = arith.addf %64, %65 : vector<2x16xf32>
    %67 = math.tanh %66 : vector<2x16xf32>
    %68 = arith.mulf %63, %67 : vector<2x16xf32>
    %c0_43 = arith.constant 0 : index
    %c0_44 = arith.constant 0 : index
    %69 = vector.load %arg15[%c0_43, %c0_44] : memref<16x64xf32, #tpu.memory_space<vmem>>, vector<16x64xf32>
    %cst_45 = arith.constant dense<0.000000e+00> : vector<2x64xf32>
    %70 = tpu.matmul %68, %69, %cst_45 {dimension_numbers = #tpu.dot_dimension_numbers<[1], [0], [0], [1], [0, 0, 1, 1], [], []>} : vector<2x16xf32>, vector<16x64xf32>, vector<2x64xf32> -> vector<2x64xf32>
    %c0_46 = arith.constant 0 : index
    %c0_47 = arith.constant 0 : index
    %71 = vector.load %arg16[%c0_46, %c0_47] : memref<16x64xf32, #tpu.memory_space<vmem>>, vector<16x64xf32>
    %cst_48 = arith.constant dense<0.000000e+00> : vector<2x64xf32>
    %72 = tpu.matmul %39, %71, %cst_48 {dimension_numbers = #tpu.dot_dimension_numbers<[1], [0], [0], [1], [0, 0, 1, 1], [], []>} : vector<2x16xf32>, vector<16x64xf32>, vector<2x64xf32> -> vector<2x64xf32>
    %73 = arith.addf %70, %72 : vector<2x64xf32>
    %c0_49 = arith.constant 0 : index
    %c0_50 = arith.constant 0 : index
    %74 = vector.load %arg17[%c0_49, %c0_50] : memref<1x64xf32, #tpu.memory_space<vmem>>, vector<1x64xf32>
    %75 = vector.broadcast %74 : vector<1x64xf32> to vector<2x64xf32>
    %76 = arith.addf %73, %75 : vector<2x64xf32>
    %77 = vector.extract_strided_slice %76 {offsets = [0, 0], sizes = [2, 16], strides = [1, 1]} : vector<2x64xf32> to vector<2x16xf32>
    %78 = arith.negf %77 : vector<2x16xf32>
    %79 = math.exp %78 : vector<2x16xf32>
    %cst_51 = arith.constant 1.000000e+00 : f32
    %80 = vector.broadcast %cst_51 : f32 to vector<2x16xf32>
    %81 = arith.addf %80, %79 : vector<2x16xf32>
    %82 = arith.divf %80, %81 : vector<2x16xf32>
    %83 = vector.extract_strided_slice %76 {offsets = [0, 16], sizes = [2, 16], strides = [1, 1]} : vector<2x64xf32> to vector<2x16xf32>
    %84 = arith.negf %83 : vector<2x16xf32>
    %85 = math.exp %84 : vector<2x16xf32>
    %cst_52 = arith.constant 1.000000e+00 : f32
    %86 = vector.broadcast %cst_52 : f32 to vector<2x16xf32>
    %87 = arith.addf %86, %85 : vector<2x16xf32>
    %88 = arith.divf %86, %87 : vector<2x16xf32>
    %89 = vector.extract_strided_slice %76 {offsets = [0, 32], sizes = [2, 16], strides = [1, 1]} : vector<2x64xf32> to vector<2x16xf32>
    %90 = math.tanh %89 : vector<2x16xf32>
    %91 = vector.extract_strided_slice %76 {offsets = [0, 48], sizes = [2, 16], strides = [1, 1]} : vector<2x64xf32> to vector<2x16xf32>
    %92 = arith.negf %91 : vector<2x16xf32>
    %93 = math.exp %92 : vector<2x16xf32>
    %cst_53 = arith.constant 1.000000e+00 : f32
    %94 = vector.broadcast %cst_53 : f32 to vector<2x16xf32>
    %95 = arith.addf %94, %93 : vector<2x16xf32>
    %96 = arith.divf %94, %95 : vector<2x16xf32>
    %97 = arith.mulf %88, %39 : vector<2x16xf32>
    %98 = arith.mulf %82, %90 : vector<2x16xf32>
    %99 = arith.addf %97, %98 : vector<2x16xf32>
    %100 = math.tanh %99 : vector<2x16xf32>
    %101 = arith.mulf %96, %100 : vector<2x16xf32>
    %102 = vector.extract_strided_slice %101 {offsets = [0, 0], sizes = [1, 16], strides = [1, 1]} : vector<2x16xf32> to vector<1x16xf32>
    %c0_54 = arith.constant 0 : index
    %c0_55 = arith.constant 0 : index
    %103 = vector.load %arg20[%c0_54, %c0_55] : memref<16x16xf32, #tpu.memory_space<vmem>>, vector<1x16xf32>
    tpu.vector_store %arg20[%c0_54, %c0_55], %102 {strides = array<i32>} : memref<16x16xf32, #tpu.memory_space<vmem>>, vector<1x16xf32>,
    %104 = vector.extract_strided_slice %101 {offsets = [1, 0], sizes = [1, 16], strides = [1, 1]} : vector<2x16xf32> to vector<1x16xf32>
    %c8 = arith.constant 8 : index
    %c0_56 = arith.constant 0 : index
    %105 = vector.load %arg20[%c8, %c0_56] : memref<16x16xf32, #tpu.memory_space<vmem>>, vector<1x16xf32>
    tpu.vector_store %arg20[%c8, %c0_56], %104 {strides = array<i32>} : memref<16x16xf32, #tpu.memory_space<vmem>>, vector<1x16xf32>,
    %106 = vector.extract_strided_slice %38 {offsets = [2, 0], sizes = [2, 64], strides = [1, 1]} : vector<16x64xf32> to vector<2x64xf32>
    %c0_57 = arith.constant 0 : index
    %c0_58 = arith.constant 0 : index
    %107 = vector.load %arg13[%c0_57, %c0_58] : memref<16x64xf32, #tpu.memory_space<vmem>>, vector<16x64xf32>
    %cst_59 = arith.constant dense<0.000000e+00> : vector<2x64xf32>
    %108 = tpu.matmul %68, %107, %cst_59 {dimension_numbers = #tpu.dot_dimension_numbers<[1], [0], [0], [1], [0, 0, 1, 1], [], []>} : vector<2x16xf32>, vector<16x64xf32>, vector<2x64xf32> -> vector<2x64xf32>
    %109 = arith.addf %106, %108 : vector<2x64xf32>
    %110 = vector.extract_strided_slice %109 {offsets = [0, 0], sizes = [2, 16], strides = [1, 1]} : vector<2x64xf32> to vector<2x16xf32>
    %111 = arith.negf %110 : vector<2x16xf32>
    %112 = math.exp %111 : vector<2x16xf32>
    %cst_60 = arith.constant 1.000000e+00 : f32
    %113 = vector.broadcast %cst_60 : f32 to vector<2x16xf32>
    %114 = arith.addf %113, %112 : vector<2x16xf32>
    %115 = arith.divf %113, %114 : vector<2x16xf32>
    %116 = vector.extract_strided_slice %109 {offsets = [0, 16], sizes = [2, 16], strides = [1, 1]} : vector<2x64xf32> to vector<2x16xf32>
    %117 = arith.negf %116 : vector<2x16xf32>
    %118 = math.exp %117 : vector<2x16xf32>
    %cst_61 = arith.constant 1.000000e+00 : f32
    %119 = vector.broadcast %cst_61 : f32 to vector<2x16xf32>
    %120 = arith.addf %119, %118 : vector<2x16xf32>
    %121 = arith.divf %119, %120 : vector<2x16xf32>
    %122 = vector.extract_strided_slice %109 {offsets = [0, 32], sizes = [2, 16], strides = [1, 1]} : vector<2x64xf32> to vector<2x16xf32>
    %123 = math.tanh %122 : vector<2x16xf32>
    %124 = vector.extract_strided_slice %109 {offsets = [0, 48], sizes = [2, 16], strides = [1, 1]} : vector<2x64xf32> to vector<2x16xf32>
    %125 = arith.negf %124 : vector<2x16xf32>
    %126 = math.exp %125 : vector<2x16xf32>
    %cst_62 = arith.constant 1.000000e+00 : f32
    %127 = vector.broadcast %cst_62 : f32 to vector<2x16xf32>
    %128 = arith.addf %127, %126 : vector<2x16xf32>
    %129 = arith.divf %127, %128 : vector<2x16xf32>
    %130 = arith.mulf %121, %66 : vector<2x16xf32>
    %131 = arith.mulf %115, %123 : vector<2x16xf32>
    %132 = arith.addf %130, %131 : vector<2x16xf32>
    %133 = math.tanh %132 : vector<2x16xf32>
    %134 = arith.mulf %129, %133 : vector<2x16xf32>
    %c0_63 = arith.constant 0 : index
    %c0_64 = arith.constant 0 : index
    %135 = vector.load %arg15[%c0_63, %c0_64] : memref<16x64xf32, #tpu.memory_space<vmem>>, vector<16x64xf32>
    %cst_65 = arith.constant dense<0.000000e+00> : vector<2x64xf32>
    %136 = tpu.matmul %134, %135, %cst_65 {dimension_numbers = #tpu.dot_dimension_numbers<[1], [0], [0], [1], [0, 0, 1, 1], [], []>} : vector<2x16xf32>, vector<16x64xf32>, vector<2x64xf32> -> vector<2x64xf32>
    %c0_66 = arith.constant 0 : index
    %c0_67 = arith.constant 0 : index
    %137 = vector.load %arg16[%c0_66, %c0_67] : memref<16x64xf32, #tpu.memory_space<vmem>>, vector<16x64xf32>
    %cst_68 = arith.constant dense<0.000000e+00> : vector<2x64xf32>
    %138 = tpu.matmul %101, %137, %cst_68 {dimension_numbers = #tpu.dot_dimension_numbers<[1], [0], [0], [1], [0, 0, 1, 1], [], []>} : vector<2x16xf32>, vector<16x64xf32>, vector<2x64xf32> -> vector<2x64xf32>
    %139 = arith.addf %136, %138 : vector<2x64xf32>
    %c0_69 = arith.constant 0 : index
    %c0_70 = arith.constant 0 : index
    %140 = vector.load %arg17[%c0_69, %c0_70] : memref<1x64xf32, #tpu.memory_space<vmem>>, vector<1x64xf32>
    %141 = vector.broadcast %140 : vector<1x64xf32> to vector<2x64xf32>
    %142 = arith.addf %139, %141 : vector<2x64xf32>
    %143 = vector.extract_strided_slice %142 {offsets = [0, 0], sizes = [2, 16], strides = [1, 1]} : vector<2x64xf32> to vector<2x16xf32>
    %144 = arith.negf %143 : vector<2x16xf32>
    %145 = math.exp %144 : vector<2x16xf32>
    %cst_71 = arith.constant 1.000000e+00 : f32
    %146 = vector.broadcast %cst_71 : f32 to vector<2x16xf32>
    %147 = arith.addf %146, %145 : vector<2x16xf32>
    %148 = arith.divf %146, %147 : vector<2x16xf32>
    %149 = vector.extract_strided_slice %142 {offsets = [0, 16], sizes = [2, 16], strides = [1, 1]} : vector<2x64xf32> to vector<2x16xf32>
    %150 = arith.negf %149 : vector<2x16xf32>
    %151 = math.exp %150 : vector<2x16xf32>
    %cst_72 = arith.constant 1.000000e+00 : f32
    %152 = vector.broadcast %cst_72 : f32 to vector<2x16xf32>
    %153 = arith.addf %152, %151 : vector<2x16xf32>
    %154 = arith.divf %152, %153 : vector<2x16xf32>
    %155 = vector.extract_strided_slice %142 {offsets = [0, 32], sizes = [2, 16], strides = [1, 1]} : vector<2x64xf32> to vector<2x16xf32>
    %156 = math.tanh %155 : vector<2x16xf32>
    %157 = vector.extract_strided_slice %142 {offsets = [0, 48], sizes = [2, 16], strides = [1, 1]} : vector<2x64xf32> to vector<2x16xf32>
    %158 = arith.negf %157 : vector<2x16xf32>
    %159 = math.exp %158 : vector<2x16xf32>
    %cst_73 = arith.constant 1.000000e+00 : f32
    %160 = vector.broadcast %cst_73 : f32 to vector<2x16xf32>
    %161 = arith.addf %160, %159 : vector<2x16xf32>
    %162 = arith.divf %160, %161 : vector<2x16xf32>
    %163 = arith.mulf %154, %99 : vector<2x16xf32>
    %164 = arith.mulf %148, %156 : vector<2x16xf32>
    %165 = arith.addf %163, %164 : vector<2x16xf32>
    %166 = math.tanh %165 : vector<2x16xf32>
    %167 = arith.mulf %162, %166 : vector<2x16xf32>
    %168 = vector.extract_strided_slice %167 {offsets = [0, 0], sizes = [1, 16], strides = [1, 1]} : vector<2x16xf32> to vector<1x16xf32>
    %c1 = arith.constant 1 : index
    %c0_74 = arith.constant 0 : index
    %169 = vector.load %arg20[%c1, %c0_74] : memref<16x16xf32, #tpu.memory_space<vmem>>, vector<1x16xf32>
    tpu.vector_store %arg20[%c1, %c0_74], %168 {strides = array<i32>} : memref<16x16xf32, #tpu.memory_space<vmem>>, vector<1x16xf32>,
    %170 = vector.extract_strided_slice %167 {offsets = [1, 0], sizes = [1, 16], strides = [1, 1]} : vector<2x16xf32> to vector<1x16xf32>
    %c9 = arith.constant 9 : index
    %c0_75 = arith.constant 0 : index
    %171 = vector.load %arg20[%c9, %c0_75] : memref<16x16xf32, #tpu.memory_space<vmem>>, vector<1x16xf32>
    tpu.vector_store %arg20[%c9, %c0_75], %170 {strides = array<i32>} : memref<16x16xf32, #tpu.memory_space<vmem>>, vector<1x16xf32>,
    %172 = vector.extract_strided_slice %38 {offsets = [4, 0], sizes = [2, 64], strides = [1, 1]} : vector<16x64xf32> to vector<2x64xf32>
    %c0_76 = arith.constant 0 : index
    %c0_77 = arith.constant 0 : index
    %173 = vector.load %arg13[%c0_76, %c0_77] : memref<16x64xf32, #tpu.memory_space<vmem>>, vector<16x64xf32>
    %cst_78 = arith.constant dense<0.000000e+00> : vector<2x64xf32>
    %174 = tpu.matmul %134, %173, %cst_78 {dimension_numbers = #tpu.dot_dimension_numbers<[1], [0], [0], [1], [0, 0, 1, 1], [], []>} : vector<2x16xf32>, vector<16x64xf32>, vector<2x64xf32> -> vector<2x64xf32>
    %175 = arith.addf %172, %174 : vector<2x64xf32>
    %176 = vector.extract_strided_slice %175 {offsets = [0, 0], sizes = [2, 16], strides = [1, 1]} : vector<2x64xf32> to vector<2x16xf32>
    %177 = arith.negf %176 : vector<2x16xf32>
    %178 = math.exp %177 : vector<2x16xf32>
    %cst_79 = arith.constant 1.000000e+00 : f32
    %179 = vector.broadcast %cst_79 : f32 to vector<2x16xf32>
    %180 = arith.addf %179, %178 : vector<2x16xf32>
    %181 = arith.divf %179, %180 : vector<2x16xf32>
    %182 = vector.extract_strided_slice %175 {offsets = [0, 16], sizes = [2, 16], strides = [1, 1]} : vector<2x64xf32> to vector<2x16xf32>
    %183 = arith.negf %182 : vector<2x16xf32>
    %184 = math.exp %183 : vector<2x16xf32>
    %cst_80 = arith.constant 1.000000e+00 : f32
    %185 = vector.broadcast %cst_80 : f32 to vector<2x16xf32>
    %186 = arith.addf %185, %184 : vector<2x16xf32>
    %187 = arith.divf %185, %186 : vector<2x16xf32>
    %188 = vector.extract_strided_slice %175 {offsets = [0, 32], sizes = [2, 16], strides = [1, 1]} : vector<2x64xf32> to vector<2x16xf32>
    %189 = math.tanh %188 : vector<2x16xf32>
    %190 = vector.extract_strided_slice %175 {offsets = [0, 48], sizes = [2, 16], strides = [1, 1]} : vector<2x64xf32> to vector<2x16xf32>
    %191 = arith.negf %190 : vector<2x16xf32>
    %192 = math.exp %191 : vector<2x16xf32>
    %cst_81 = arith.constant 1.000000e+00 : f32
    %193 = vector.broadcast %cst_81 : f32 to vector<2x16xf32>
    %194 = arith.addf %193, %192 : vector<2x16xf32>
    %195 = arith.divf %193, %194 : vector<2x16xf32>
    %196 = arith.mulf %187, %132 : vector<2x16xf32>
    %197 = arith.mulf %181, %189 : vector<2x16xf32>
    %198 = arith.addf %196, %197 : vector<2x16xf32>
    %199 = math.tanh %198 : vector<2x16xf32>
    %200 = arith.mulf %195, %199 : vector<2x16xf32>
    %c0_82 = arith.constant 0 : index
    %c0_83 = arith.constant 0 : index
    %201 = vector.load %arg15[%c0_82, %c0_83] : memref<16x64xf32, #tpu.memory_space<vmem>>, vector<16x64xf32>
    %cst_84 = arith.constant dense<0.000000e+00> : vector<2x64xf32>
    %202 = tpu.matmul %200, %201, %cst_84 {dimension_numbers = #tpu.dot_dimension_numbers<[1], [0], [0], [1], [0, 0, 1, 1], [], []>} : vector<2x16xf32>, vector<16x64xf32>, vector<2x64xf32> -> vector<2x64xf32>
    %c0_85 = arith.constant 0 : index
    %c0_86 = arith.constant 0 : index
    %203 = vector.load %arg16[%c0_85, %c0_86] : memref<16x64xf32, #tpu.memory_space<vmem>>, vector<16x64xf32>
    %cst_87 = arith.constant dense<0.000000e+00> : vector<2x64xf32>
    %204 = tpu.matmul %167, %203, %cst_87 {dimension_numbers = #tpu.dot_dimension_numbers<[1], [0], [0], [1], [0, 0, 1, 1], [], []>} : vector<2x16xf32>, vector<16x64xf32>, vector<2x64xf32> -> vector<2x64xf32>
    %205 = arith.addf %202, %204 : vector<2x64xf32>
    %c0_88 = arith.constant 0 : index
    %c0_89 = arith.constant 0 : index
    %206 = vector.load %arg17[%c0_88, %c0_89] : memref<1x64xf32, #tpu.memory_space<vmem>>, vector<1x64xf32>
    %207 = vector.broadcast %206 : vector<1x64xf32> to vector<2x64xf32>
    %208 = arith.addf %205, %207 : vector<2x64xf32>
    %209 = vector.extract_strided_slice %208 {offsets = [0, 0], sizes = [2, 16], strides = [1, 1]} : vector<2x64xf32> to vector<2x16xf32>
    %210 = arith.negf %209 : vector<2x16xf32>
    %211 = math.exp %210 : vector<2x16xf32>
    %cst_90 = arith.constant 1.000000e+00 : f32
    %212 = vector.broadcast %cst_90 : f32 to vector<2x16xf32>
    %213 = arith.addf %212, %211 : vector<2x16xf32>
    %214 = arith.divf %212, %213 : vector<2x16xf32>
    %215 = vector.extract_strided_slice %208 {offsets = [0, 16], sizes = [2, 16], strides = [1, 1]} : vector<2x64xf32> to vector<2x16xf32>
    %216 = arith.negf %215 : vector<2x16xf32>
    %217 = math.exp %216 : vector<2x16xf32>
    %cst_91 = arith.constant 1.000000e+00 : f32
    %218 = vector.broadcast %cst_91 : f32 to vector<2x16xf32>
    %219 = arith.addf %218, %217 : vector<2x16xf32>
    %220 = arith.divf %218, %219 : vector<2x16xf32>
    %221 = vector.extract_strided_slice %208 {offsets = [0, 32], sizes = [2, 16], strides = [1, 1]} : vector<2x64xf32> to vector<2x16xf32>
    %222 = math.tanh %221 : vector<2x16xf32>
    %223 = vector.extract_strided_slice %208 {offsets = [0, 48], sizes = [2, 16], strides = [1, 1]} : vector<2x64xf32> to vector<2x16xf32>
    %224 = arith.negf %223 : vector<2x16xf32>
    %225 = math.exp %224 : vector<2x16xf32>
    %cst_92 = arith.constant 1.000000e+00 : f32
    %226 = vector.broadcast %cst_92 : f32 to vector<2x16xf32>
    %227 = arith.addf %226, %225 : vector<2x16xf32>
    %228 = arith.divf %226, %227 : vector<2x16xf32>
    %229 = arith.mulf %220, %165 : vector<2x16xf32>
    %230 = arith.mulf %214, %222 : vector<2x16xf32>
    %231 = arith.addf %229, %230 : vector<2x16xf32>
    %232 = math.tanh %231 : vector<2x16xf32>
    %233 = arith.mulf %228, %232 : vector<2x16xf32>
    %234 = vector.extract_strided_slice %233 {offsets = [0, 0], sizes = [1, 16], strides = [1, 1]} : vector<2x16xf32> to vector<1x16xf32>
    %c2 = arith.constant 2 : index
    %c0_93 = arith.constant 0 : index
    %235 = vector.load %arg20[%c2, %c0_93] : memref<16x16xf32, #tpu.memory_space<vmem>>, vector<1x16xf32>
    tpu.vector_store %arg20[%c2, %c0_93], %234 {strides = array<i32>} : memref<16x16xf32, #tpu.memory_space<vmem>>, vector<1x16xf32>,
    %236 = vector.extract_strided_slice %233 {offsets = [1, 0], sizes = [1, 16], strides = [1, 1]} : vector<2x16xf32> to vector<1x16xf32>
    %c10 = arith.constant 10 : index
    %c0_94 = arith.constant 0 : index
    %237 = vector.load %arg20[%c10, %c0_94] : memref<16x16xf32, #tpu.memory_space<vmem>>, vector<1x16xf32>
    tpu.vector_store %arg20[%c10, %c0_94], %236 {strides = array<i32>} : memref<16x16xf32, #tpu.memory_space<vmem>>, vector<1x16xf32>,
    %238 = vector.extract_strided_slice %38 {offsets = [6, 0], sizes = [2, 64], strides = [1, 1]} : vector<16x64xf32> to vector<2x64xf32>
    %c0_95 = arith.constant 0 : index
    %c0_96 = arith.constant 0 : index
    %239 = vector.load %arg13[%c0_95, %c0_96] : memref<16x64xf32, #tpu.memory_space<vmem>>, vector<16x64xf32>
    %cst_97 = arith.constant dense<0.000000e+00> : vector<2x64xf32>
    %240 = tpu.matmul %200, %239, %cst_97 {dimension_numbers = #tpu.dot_dimension_numbers<[1], [0], [0], [1], [0, 0, 1, 1], [], []>} : vector<2x16xf32>, vector<16x64xf32>, vector<2x64xf32> -> vector<2x64xf32>
    %241 = arith.addf %238, %240 : vector<2x64xf32>
    %242 = vector.extract_strided_slice %241 {offsets = [0, 0], sizes = [2, 16], strides = [1, 1]} : vector<2x64xf32> to vector<2x16xf32>
    %243 = arith.negf %242 : vector<2x16xf32>
    %244 = math.exp %243 : vector<2x16xf32>
    %cst_98 = arith.constant 1.000000e+00 : f32
    %245 = vector.broadcast %cst_98 : f32 to vector<2x16xf32>
    %246 = arith.addf %245, %244 : vector<2x16xf32>
    %247 = arith.divf %245, %246 : vector<2x16xf32>
    %248 = vector.extract_strided_slice %241 {offsets = [0, 16], sizes = [2, 16], strides = [1, 1]} : vector<2x64xf32> to vector<2x16xf32>
    %249 = arith.negf %248 : vector<2x16xf32>
    %250 = math.exp %249 : vector<2x16xf32>
    %cst_99 = arith.constant 1.000000e+00 : f32
    %251 = vector.broadcast %cst_99 : f32 to vector<2x16xf32>
    %252 = arith.addf %251, %250 : vector<2x16xf32>
    %253 = arith.divf %251, %252 : vector<2x16xf32>
    %254 = vector.extract_strided_slice %241 {offsets = [0, 32], sizes = [2, 16], strides = [1, 1]} : vector<2x64xf32> to vector<2x16xf32>
    %255 = math.tanh %254 : vector<2x16xf32>
    %256 = vector.extract_strided_slice %241 {offsets = [0, 48], sizes = [2, 16], strides = [1, 1]} : vector<2x64xf32> to vector<2x16xf32>
    %257 = arith.negf %256 : vector<2x16xf32>
    %258 = math.exp %257 : vector<2x16xf32>
    %cst_100 = arith.constant 1.000000e+00 : f32
    %259 = vector.broadcast %cst_100 : f32 to vector<2x16xf32>
    %260 = arith.addf %259, %258 : vector<2x16xf32>
    %261 = arith.divf %259, %260 : vector<2x16xf32>
    %262 = arith.mulf %253, %198 : vector<2x16xf32>
    %263 = arith.mulf %247, %255 : vector<2x16xf32>
    %264 = arith.addf %262, %263 : vector<2x16xf32>
    %265 = math.tanh %264 : vector<2x16xf32>
    %266 = arith.mulf %261, %265 : vector<2x16xf32>
    %c0_101 = arith.constant 0 : index
    %c0_102 = arith.constant 0 : index
    %267 = vector.load %arg15[%c0_101, %c0_102] : memref<16x64xf32, #tpu.memory_space<vmem>>, vector<16x64xf32>
    %cst_103 = arith.constant dense<0.000000e+00> : vector<2x64xf32>
    %268 = tpu.matmul %266, %267, %cst_103 {dimension_numbers = #tpu.dot_dimension_numbers<[1], [0], [0], [1], [0, 0, 1, 1], [], []>} : vector<2x16xf32>, vector<16x64xf32>, vector<2x64xf32> -> vector<2x64xf32>
    %c0_104 = arith.constant 0 : index
    %c0_105 = arith.constant 0 : index
    %269 = vector.load %arg16[%c0_104, %c0_105] : memref<16x64xf32, #tpu.memory_space<vmem>>, vector<16x64xf32>
    %cst_106 = arith.constant dense<0.000000e+00> : vector<2x64xf32>
    %270 = tpu.matmul %233, %269, %cst_106 {dimension_numbers = #tpu.dot_dimension_numbers<[1], [0], [0], [1], [0, 0, 1, 1], [], []>} : vector<2x16xf32>, vector<16x64xf32>, vector<2x64xf32> -> vector<2x64xf32>
    %271 = arith.addf %268, %270 : vector<2x64xf32>
    %c0_107 = arith.constant 0 : index
    %c0_108 = arith.constant 0 : index
    %272 = vector.load %arg17[%c0_107, %c0_108] : memref<1x64xf32, #tpu.memory_space<vmem>>, vector<1x64xf32>
    %273 = vector.broadcast %272 : vector<1x64xf32> to vector<2x64xf32>
    %274 = arith.addf %271, %273 : vector<2x64xf32>
    %275 = vector.extract_strided_slice %274 {offsets = [0, 0], sizes = [2, 16], strides = [1, 1]} : vector<2x64xf32> to vector<2x16xf32>
    %276 = arith.negf %275 : vector<2x16xf32>
    %277 = math.exp %276 : vector<2x16xf32>
    %cst_109 = arith.constant 1.000000e+00 : f32
    %278 = vector.broadcast %cst_109 : f32 to vector<2x16xf32>
    %279 = arith.addf %278, %277 : vector<2x16xf32>
    %280 = arith.divf %278, %279 : vector<2x16xf32>
    %281 = vector.extract_strided_slice %274 {offsets = [0, 16], sizes = [2, 16], strides = [1, 1]} : vector<2x64xf32> to vector<2x16xf32>
    %282 = arith.negf %281 : vector<2x16xf32>
    %283 = math.exp %282 : vector<2x16xf32>
    %cst_110 = arith.constant 1.000000e+00 : f32
    %284 = vector.broadcast %cst_110 : f32 to vector<2x16xf32>
    %285 = arith.addf %284, %283 : vector<2x16xf32>
    %286 = arith.divf %284, %285 : vector<2x16xf32>
    %287 = vector.extract_strided_slice %274 {offsets = [0, 32], sizes = [2, 16], strides = [1, 1]} : vector<2x64xf32> to vector<2x16xf32>
    %288 = math.tanh %287 : vector<2x16xf32>
    %289 = vector.extract_strided_slice %274 {offsets = [0, 48], sizes = [2, 16], strides = [1, 1]} : vector<2x64xf32> to vector<2x16xf32>
    %290 = arith.negf %289 : vector<2x16xf32>
    %291 = math.exp %290 : vector<2x16xf32>
    %cst_111 = arith.constant 1.000000e+00 : f32
    %292 = vector.broadcast %cst_111 : f32 to vector<2x16xf32>
    %293 = arith.addf %292, %291 : vector<2x16xf32>
    %294 = arith.divf %292, %293 : vector<2x16xf32>
    %295 = arith.mulf %286, %231 : vector<2x16xf32>
    %296 = arith.mulf %280, %288 : vector<2x16xf32>
    %297 = arith.addf %295, %296 : vector<2x16xf32>
    %298 = math.tanh %297 : vector<2x16xf32>
    %299 = arith.mulf %294, %298 : vector<2x16xf32>
    %300 = vector.extract_strided_slice %299 {offsets = [0, 0], sizes = [1, 16], strides = [1, 1]} : vector<2x16xf32> to vector<1x16xf32>
    %c3 = arith.constant 3 : index
    %c0_112 = arith.constant 0 : index
    %301 = vector.load %arg20[%c3, %c0_112] : memref<16x16xf32, #tpu.memory_space<vmem>>, vector<1x16xf32>
    tpu.vector_store %arg20[%c3, %c0_112], %300 {strides = array<i32>} : memref<16x16xf32, #tpu.memory_space<vmem>>, vector<1x16xf32>,
    %302 = vector.extract_strided_slice %299 {offsets = [1, 0], sizes = [1, 16], strides = [1, 1]} : vector<2x16xf32> to vector<1x16xf32>
    %c11 = arith.constant 11 : index
    %c0_113 = arith.constant 0 : index
    %303 = vector.load %arg20[%c11, %c0_113] : memref<16x16xf32, #tpu.memory_space<vmem>>, vector<1x16xf32>
    tpu.vector_store %arg20[%c11, %c0_113], %302 {strides = array<i32>} : memref<16x16xf32, #tpu.memory_space<vmem>>, vector<1x16xf32>,
    %304 = vector.extract_strided_slice %38 {offsets = [8, 0], sizes = [2, 64], strides = [1, 1]} : vector<16x64xf32> to vector<2x64xf32>
    %c0_114 = arith.constant 0 : index
    %c0_115 = arith.constant 0 : index
    %305 = vector.load %arg13[%c0_114, %c0_115] : memref<16x64xf32, #tpu.memory_space<vmem>>, vector<16x64xf32>
    %cst_116 = arith.constant dense<0.000000e+00> : vector<2x64xf32>
    %306 = tpu.matmul %266, %305, %cst_116 {dimension_numbers = #tpu.dot_dimension_numbers<[1], [0], [0], [1], [0, 0, 1, 1], [], []>} : vector<2x16xf32>, vector<16x64xf32>, vector<2x64xf32> -> vector<2x64xf32>
    %307 = arith.addf %304, %306 : vector<2x64xf32>
    %308 = vector.extract_strided_slice %307 {offsets = [0, 0], sizes = [2, 16], strides = [1, 1]} : vector<2x64xf32> to vector<2x16xf32>
    %309 = arith.negf %308 : vector<2x16xf32>
    %310 = math.exp %309 : vector<2x16xf32>
    %cst_117 = arith.constant 1.000000e+00 : f32
    %311 = vector.broadcast %cst_117 : f32 to vector<2x16xf32>
    %312 = arith.addf %311, %310 : vector<2x16xf32>
    %313 = arith.divf %311, %312 : vector<2x16xf32>
    %314 = vector.extract_strided_slice %307 {offsets = [0, 16], sizes = [2, 16], strides = [1, 1]} : vector<2x64xf32> to vector<2x16xf32>
    %315 = arith.negf %314 : vector<2x16xf32>
    %316 = math.exp %315 : vector<2x16xf32>
    %cst_118 = arith.constant 1.000000e+00 : f32
    %317 = vector.broadcast %cst_118 : f32 to vector<2x16xf32>
    %318 = arith.addf %317, %316 : vector<2x16xf32>
    %319 = arith.divf %317, %318 : vector<2x16xf32>
    %320 = vector.extract_strided_slice %307 {offsets = [0, 32], sizes = [2, 16], strides = [1, 1]} : vector<2x64xf32> to vector<2x16xf32>
    %321 = math.tanh %320 : vector<2x16xf32>
    %322 = vector.extract_strided_slice %307 {offsets = [0, 48], sizes = [2, 16], strides = [1, 1]} : vector<2x64xf32> to vector<2x16xf32>
    %323 = arith.negf %322 : vector<2x16xf32>
    %324 = math.exp %323 : vector<2x16xf32>
    %cst_119 = arith.constant 1.000000e+00 : f32
    %325 = vector.broadcast %cst_119 : f32 to vector<2x16xf32>
    %326 = arith.addf %325, %324 : vector<2x16xf32>
    %327 = arith.divf %325, %326 : vector<2x16xf32>
    %328 = arith.mulf %319, %264 : vector<2x16xf32>
    %329 = arith.mulf %313, %321 : vector<2x16xf32>
    %330 = arith.addf %328, %329 : vector<2x16xf32>
    %331 = math.tanh %330 : vector<2x16xf32>
    %332 = arith.mulf %327, %331 : vector<2x16xf32>
    %c0_120 = arith.constant 0 : index
    %c0_121 = arith.constant 0 : index
    %333 = vector.load %arg15[%c0_120, %c0_121] : memref<16x64xf32, #tpu.memory_space<vmem>>, vector<16x64xf32>
    %cst_122 = arith.constant dense<0.000000e+00> : vector<2x64xf32>
    %334 = tpu.matmul %332, %333, %cst_122 {dimension_numbers = #tpu.dot_dimension_numbers<[1], [0], [0], [1], [0, 0, 1, 1], [], []>} : vector<2x16xf32>, vector<16x64xf32>, vector<2x64xf32> -> vector<2x64xf32>
    %c0_123 = arith.constant 0 : index
    %c0_124 = arith.constant 0 : index
    %335 = vector.load %arg16[%c0_123, %c0_124] : memref<16x64xf32, #tpu.memory_space<vmem>>, vector<16x64xf32>
    %cst_125 = arith.constant dense<0.000000e+00> : vector<2x64xf32>
    %336 = tpu.matmul %299, %335, %cst_125 {dimension_numbers = #tpu.dot_dimension_numbers<[1], [0], [0], [1], [0, 0, 1, 1], [], []>} : vector<2x16xf32>, vector<16x64xf32>, vector<2x64xf32> -> vector<2x64xf32>
    %337 = arith.addf %334, %336 : vector<2x64xf32>
    %c0_126 = arith.constant 0 : index
    %c0_127 = arith.constant 0 : index
    %338 = vector.load %arg17[%c0_126, %c0_127] : memref<1x64xf32, #tpu.memory_space<vmem>>, vector<1x64xf32>
    %339 = vector.broadcast %338 : vector<1x64xf32> to vector<2x64xf32>
    %340 = arith.addf %337, %339 : vector<2x64xf32>
    %341 = vector.extract_strided_slice %340 {offsets = [0, 0], sizes = [2, 16], strides = [1, 1]} : vector<2x64xf32> to vector<2x16xf32>
    %342 = arith.negf %341 : vector<2x16xf32>
    %343 = math.exp %342 : vector<2x16xf32>
    %cst_128 = arith.constant 1.000000e+00 : f32
    %344 = vector.broadcast %cst_128 : f32 to vector<2x16xf32>
    %345 = arith.addf %344, %343 : vector<2x16xf32>
    %346 = arith.divf %344, %345 : vector<2x16xf32>
    %347 = vector.extract_strided_slice %340 {offsets = [0, 16], sizes = [2, 16], strides = [1, 1]} : vector<2x64xf32> to vector<2x16xf32>
    %348 = arith.negf %347 : vector<2x16xf32>
    %349 = math.exp %348 : vector<2x16xf32>
    %cst_129 = arith.constant 1.000000e+00 : f32
    %350 = vector.broadcast %cst_129 : f32 to vector<2x16xf32>
    %351 = arith.addf %350, %349 : vector<2x16xf32>
    %352 = arith.divf %350, %351 : vector<2x16xf32>
    %353 = vector.extract_strided_slice %340 {offsets = [0, 32], sizes = [2, 16], strides = [1, 1]} : vector<2x64xf32> to vector<2x16xf32>
    %354 = math.tanh %353 : vector<2x16xf32>
    %355 = vector.extract_strided_slice %340 {offsets = [0, 48], sizes = [2, 16], strides = [1, 1]} : vector<2x64xf32> to vector<2x16xf32>
    %356 = arith.negf %355 : vector<2x16xf32>
    %357 = math.exp %356 : vector<2x16xf32>
    %cst_130 = arith.constant 1.000000e+00 : f32
    %358 = vector.broadcast %cst_130 : f32 to vector<2x16xf32>
    %359 = arith.addf %358, %357 : vector<2x16xf32>
    %360 = arith.divf %358, %359 : vector<2x16xf32>
    %361 = arith.mulf %352, %297 : vector<2x16xf32>
    %362 = arith.mulf %346, %354 : vector<2x16xf32>
    %363 = arith.addf %361, %362 : vector<2x16xf32>
    %364 = math.tanh %363 : vector<2x16xf32>
    %365 = arith.mulf %360, %364 : vector<2x16xf32>
    %366 = vector.extract_strided_slice %365 {offsets = [0, 0], sizes = [1, 16], strides = [1, 1]} : vector<2x16xf32> to vector<1x16xf32>
    %c4 = arith.constant 4 : index
    %c0_131 = arith.constant 0 : index
    %367 = vector.load %arg20[%c4, %c0_131] : memref<16x16xf32, #tpu.memory_space<vmem>>, vector<1x16xf32>
    tpu.vector_store %arg20[%c4, %c0_131], %366 {strides = array<i32>} : memref<16x16xf32, #tpu.memory_space<vmem>>, vector<1x16xf32>,
    %368 = vector.extract_strided_slice %365 {offsets = [1, 0], sizes = [1, 16], strides = [1, 1]} : vector<2x16xf32> to vector<1x16xf32>
    %c12 = arith.constant 12 : index
    %c0_132 = arith.constant 0 : index
    %369 = vector.load %arg20[%c12, %c0_132] : memref<16x16xf32, #tpu.memory_space<vmem>>, vector<1x16xf32>
    tpu.vector_store %arg20[%c12, %c0_132], %368 {strides = array<i32>} : memref<16x16xf32, #tpu.memory_space<vmem>>, vector<1x16xf32>,
    %370 = vector.extract_strided_slice %38 {offsets = [10, 0], sizes = [2, 64], strides = [1, 1]} : vector<16x64xf32> to vector<2x64xf32>
    %c0_133 = arith.constant 0 : index
    %c0_134 = arith.constant 0 : index
    %371 = vector.load %arg13[%c0_133, %c0_134] : memref<16x64xf32, #tpu.memory_space<vmem>>, vector<16x64xf32>
    %cst_135 = arith.constant dense<0.000000e+00> : vector<2x64xf32>
    %372 = tpu.matmul %332, %371, %cst_135 {dimension_numbers = #tpu.dot_dimension_numbers<[1], [0], [0], [1], [0, 0, 1, 1], [], []>} : vector<2x16xf32>, vector<16x64xf32>, vector<2x64xf32> -> vector<2x64xf32>
    %373 = arith.addf %370, %372 : vector<2x64xf32>
    %374 = vector.extract_strided_slice %373 {offsets = [0, 0], sizes = [2, 16], strides = [1, 1]} : vector<2x64xf32> to vector<2x16xf32>
    %375 = arith.negf %374 : vector<2x16xf32>
    %376 = math.exp %375 : vector<2x16xf32>
    %cst_136 = arith.constant 1.000000e+00 : f32
    %377 = vector.broadcast %cst_136 : f32 to vector<2x16xf32>
    %378 = arith.addf %377, %376 : vector<2x16xf32>
    %379 = arith.divf %377, %378 : vector<2x16xf32>
    %380 = vector.extract_strided_slice %373 {offsets = [0, 16], sizes = [2, 16], strides = [1, 1]} : vector<2x64xf32> to vector<2x16xf32>
    %381 = arith.negf %380 : vector<2x16xf32>
    %382 = math.exp %381 : vector<2x16xf32>
    %cst_137 = arith.constant 1.000000e+00 : f32
    %383 = vector.broadcast %cst_137 : f32 to vector<2x16xf32>
    %384 = arith.addf %383, %382 : vector<2x16xf32>
    %385 = arith.divf %383, %384 : vector<2x16xf32>
    %386 = vector.extract_strided_slice %373 {offsets = [0, 32], sizes = [2, 16], strides = [1, 1]} : vector<2x64xf32> to vector<2x16xf32>
    %387 = math.tanh %386 : vector<2x16xf32>
    %388 = vector.extract_strided_slice %373 {offsets = [0, 48], sizes = [2, 16], strides = [1, 1]} : vector<2x64xf32> to vector<2x16xf32>
    %389 = arith.negf %388 : vector<2x16xf32>
    %390 = math.exp %389 : vector<2x16xf32>
    %cst_138 = arith.constant 1.000000e+00 : f32
    %391 = vector.broadcast %cst_138 : f32 to vector<2x16xf32>
    %392 = arith.addf %391, %390 : vector<2x16xf32>
    %393 = arith.divf %391, %392 : vector<2x16xf32>
    %394 = arith.mulf %385, %330 : vector<2x16xf32>
    %395 = arith.mulf %379, %387 : vector<2x16xf32>
    %396 = arith.addf %394, %395 : vector<2x16xf32>
    %397 = math.tanh %396 : vector<2x16xf32>
    %398 = arith.mulf %393, %397 : vector<2x16xf32>
    %c0_139 = arith.constant 0 : index
    %c0_140 = arith.constant 0 : index
    %399 = vector.load %arg15[%c0_139, %c0_140] : memref<16x64xf32, #tpu.memory_space<vmem>>, vector<16x64xf32>
    %cst_141 = arith.constant dense<0.000000e+00> : vector<2x64xf32>
    %400 = tpu.matmul %398, %399, %cst_141 {dimension_numbers = #tpu.dot_dimension_numbers<[1], [0], [0], [1], [0, 0, 1, 1], [], []>} : vector<2x16xf32>, vector<16x64xf32>, vector<2x64xf32> -> vector<2x64xf32>
    %c0_142 = arith.constant 0 : index
    %c0_143 = arith.constant 0 : index
    %401 = vector.load %arg16[%c0_142, %c0_143] : memref<16x64xf32, #tpu.memory_space<vmem>>, vector<16x64xf32>
    %cst_144 = arith.constant dense<0.000000e+00> : vector<2x64xf32>
    %402 = tpu.matmul %365, %401, %cst_144 {dimension_numbers = #tpu.dot_dimension_numbers<[1], [0], [0], [1], [0, 0, 1, 1], [], []>} : vector<2x16xf32>, vector<16x64xf32>, vector<2x64xf32> -> vector<2x64xf32>
    %403 = arith.addf %400, %402 : vector<2x64xf32>
    %c0_145 = arith.constant 0 : index
    %c0_146 = arith.constant 0 : index
    %404 = vector.load %arg17[%c0_145, %c0_146] : memref<1x64xf32, #tpu.memory_space<vmem>>, vector<1x64xf32>
    %405 = vector.broadcast %404 : vector<1x64xf32> to vector<2x64xf32>
    %406 = arith.addf %403, %405 : vector<2x64xf32>
    %407 = vector.extract_strided_slice %406 {offsets = [0, 0], sizes = [2, 16], strides = [1, 1]} : vector<2x64xf32> to vector<2x16xf32>
    %408 = arith.negf %407 : vector<2x16xf32>
    %409 = math.exp %408 : vector<2x16xf32>
    %cst_147 = arith.constant 1.000000e+00 : f32
    %410 = vector.broadcast %cst_147 : f32 to vector<2x16xf32>
    %411 = arith.addf %410, %409 : vector<2x16xf32>
    %412 = arith.divf %410, %411 : vector<2x16xf32>
    %413 = vector.extract_strided_slice %406 {offsets = [0, 16], sizes = [2, 16], strides = [1, 1]} : vector<2x64xf32> to vector<2x16xf32>
    %414 = arith.negf %413 : vector<2x16xf32>
    %415 = math.exp %414 : vector<2x16xf32>
    %cst_148 = arith.constant 1.000000e+00 : f32
    %416 = vector.broadcast %cst_148 : f32 to vector<2x16xf32>
    %417 = arith.addf %416, %415 : vector<2x16xf32>
    %418 = arith.divf %416, %417 : vector<2x16xf32>
    %419 = vector.extract_strided_slice %406 {offsets = [0, 32], sizes = [2, 16], strides = [1, 1]} : vector<2x64xf32> to vector<2x16xf32>
    %420 = math.tanh %419 : vector<2x16xf32>
    %421 = vector.extract_strided_slice %406 {offsets = [0, 48], sizes = [2, 16], strides = [1, 1]} : vector<2x64xf32> to vector<2x16xf32>
    %422 = arith.negf %421 : vector<2x16xf32>
    %423 = math.exp %422 : vector<2x16xf32>
    %cst_149 = arith.constant 1.000000e+00 : f32
    %424 = vector.broadcast %cst_149 : f32 to vector<2x16xf32>
    %425 = arith.addf %424, %423 : vector<2x16xf32>
    %426 = arith.divf %424, %425 : vector<2x16xf32>
    %427 = arith.mulf %418, %363 : vector<2x16xf32>
    %428 = arith.mulf %412, %420 : vector<2x16xf32>
    %429 = arith.addf %427, %428 : vector<2x16xf32>
    %430 = math.tanh %429 : vector<2x16xf32>
    %431 = arith.mulf %426, %430 : vector<2x16xf32>
    %432 = vector.extract_strided_slice %431 {offsets = [0, 0], sizes = [1, 16], strides = [1, 1]} : vector<2x16xf32> to vector<1x16xf32>
    %c5 = arith.constant 5 : index
    %c0_150 = arith.constant 0 : index
    %433 = vector.load %arg20[%c5, %c0_150] : memref<16x16xf32, #tpu.memory_space<vmem>>, vector<1x16xf32>
    tpu.vector_store %arg20[%c5, %c0_150], %432 {strides = array<i32>} : memref<16x16xf32, #tpu.memory_space<vmem>>, vector<1x16xf32>,
    %434 = vector.extract_strided_slice %431 {offsets = [1, 0], sizes = [1, 16], strides = [1, 1]} : vector<2x16xf32> to vector<1x16xf32>
    %c13 = arith.constant 13 : index
    %c0_151 = arith.constant 0 : index
    %435 = vector.load %arg20[%c13, %c0_151] : memref<16x16xf32, #tpu.memory_space<vmem>>, vector<1x16xf32>
    tpu.vector_store %arg20[%c13, %c0_151], %434 {strides = array<i32>} : memref<16x16xf32, #tpu.memory_space<vmem>>, vector<1x16xf32>,
    %436 = vector.extract_strided_slice %38 {offsets = [12, 0], sizes = [2, 64], strides = [1, 1]} : vector<16x64xf32> to vector<2x64xf32>
    %c0_152 = arith.constant 0 : index
    %c0_153 = arith.constant 0 : index
    %437 = vector.load %arg13[%c0_152, %c0_153] : memref<16x64xf32, #tpu.memory_space<vmem>>, vector<16x64xf32>
    %cst_154 = arith.constant dense<0.000000e+00> : vector<2x64xf32>
    %438 = tpu.matmul %398, %437, %cst_154 {dimension_numbers = #tpu.dot_dimension_numbers<[1], [0], [0], [1], [0, 0, 1, 1], [], []>} : vector<2x16xf32>, vector<16x64xf32>, vector<2x64xf32> -> vector<2x64xf32>
    %439 = arith.addf %436, %438 : vector<2x64xf32>
    %440 = vector.extract_strided_slice %439 {offsets = [0, 0], sizes = [2, 16], strides = [1, 1]} : vector<2x64xf32> to vector<2x16xf32>
    %441 = arith.negf %440 : vector<2x16xf32>
    %442 = math.exp %441 : vector<2x16xf32>
    %cst_155 = arith.constant 1.000000e+00 : f32
    %443 = vector.broadcast %cst_155 : f32 to vector<2x16xf32>
    %444 = arith.addf %443, %442 : vector<2x16xf32>
    %445 = arith.divf %443, %444 : vector<2x16xf32>
    %446 = vector.extract_strided_slice %439 {offsets = [0, 16], sizes = [2, 16], strides = [1, 1]} : vector<2x64xf32> to vector<2x16xf32>
    %447 = arith.negf %446 : vector<2x16xf32>
    %448 = math.exp %447 : vector<2x16xf32>
    %cst_156 = arith.constant 1.000000e+00 : f32
    %449 = vector.broadcast %cst_156 : f32 to vector<2x16xf32>
    %450 = arith.addf %449, %448 : vector<2x16xf32>
    %451 = arith.divf %449, %450 : vector<2x16xf32>
    %452 = vector.extract_strided_slice %439 {offsets = [0, 32], sizes = [2, 16], strides = [1, 1]} : vector<2x64xf32> to vector<2x16xf32>
    %453 = math.tanh %452 : vector<2x16xf32>
    %454 = vector.extract_strided_slice %439 {offsets = [0, 48], sizes = [2, 16], strides = [1, 1]} : vector<2x64xf32> to vector<2x16xf32>
    %455 = arith.negf %454 : vector<2x16xf32>
    %456 = math.exp %455 : vector<2x16xf32>
    %cst_157 = arith.constant 1.000000e+00 : f32
    %457 = vector.broadcast %cst_157 : f32 to vector<2x16xf32>
    %458 = arith.addf %457, %456 : vector<2x16xf32>
    %459 = arith.divf %457, %458 : vector<2x16xf32>
    %460 = arith.mulf %451, %396 : vector<2x16xf32>
    %461 = arith.mulf %445, %453 : vector<2x16xf32>
    %462 = arith.addf %460, %461 : vector<2x16xf32>
    %463 = math.tanh %462 : vector<2x16xf32>
    %464 = arith.mulf %459, %463 : vector<2x16xf32>
    %c0_158 = arith.constant 0 : index
    %c0_159 = arith.constant 0 : index
    %465 = vector.load %arg15[%c0_158, %c0_159] : memref<16x64xf32, #tpu.memory_space<vmem>>, vector<16x64xf32>
    %cst_160 = arith.constant dense<0.000000e+00> : vector<2x64xf32>
    %466 = tpu.matmul %464, %465, %cst_160 {dimension_numbers = #tpu.dot_dimension_numbers<[1], [0], [0], [1], [0, 0, 1, 1], [], []>} : vector<2x16xf32>, vector<16x64xf32>, vector<2x64xf32> -> vector<2x64xf32>
    %c0_161 = arith.constant 0 : index
    %c0_162 = arith.constant 0 : index
    %467 = vector.load %arg16[%c0_161, %c0_162] : memref<16x64xf32, #tpu.memory_space<vmem>>, vector<16x64xf32>
    %cst_163 = arith.constant dense<0.000000e+00> : vector<2x64xf32>
    %468 = tpu.matmul %431, %467, %cst_163 {dimension_numbers = #tpu.dot_dimension_numbers<[1], [0], [0], [1], [0, 0, 1, 1], [], []>} : vector<2x16xf32>, vector<16x64xf32>, vector<2x64xf32> -> vector<2x64xf32>
    %469 = arith.addf %466, %468 : vector<2x64xf32>
    %c0_164 = arith.constant 0 : index
    %c0_165 = arith.constant 0 : index
    %470 = vector.load %arg17[%c0_164, %c0_165] : memref<1x64xf32, #tpu.memory_space<vmem>>, vector<1x64xf32>
    %471 = vector.broadcast %470 : vector<1x64xf32> to vector<2x64xf32>
    %472 = arith.addf %469, %471 : vector<2x64xf32>
    %473 = vector.extract_strided_slice %472 {offsets = [0, 0], sizes = [2, 16], strides = [1, 1]} : vector<2x64xf32> to vector<2x16xf32>
    %474 = arith.negf %473 : vector<2x16xf32>
    %475 = math.exp %474 : vector<2x16xf32>
    %cst_166 = arith.constant 1.000000e+00 : f32
    %476 = vector.broadcast %cst_166 : f32 to vector<2x16xf32>
    %477 = arith.addf %476, %475 : vector<2x16xf32>
    %478 = arith.divf %476, %477 : vector<2x16xf32>
    %479 = vector.extract_strided_slice %472 {offsets = [0, 16], sizes = [2, 16], strides = [1, 1]} : vector<2x64xf32> to vector<2x16xf32>
    %480 = arith.negf %479 : vector<2x16xf32>
    %481 = math.exp %480 : vector<2x16xf32>
    %cst_167 = arith.constant 1.000000e+00 : f32
    %482 = vector.broadcast %cst_167 : f32 to vector<2x16xf32>
    %483 = arith.addf %482, %481 : vector<2x16xf32>
    %484 = arith.divf %482, %483 : vector<2x16xf32>
    %485 = vector.extract_strided_slice %472 {offsets = [0, 32], sizes = [2, 16], strides = [1, 1]} : vector<2x64xf32> to vector<2x16xf32>
    %486 = math.tanh %485 : vector<2x16xf32>
    %487 = vector.extract_strided_slice %472 {offsets = [0, 48], sizes = [2, 16], strides = [1, 1]} : vector<2x64xf32> to vector<2x16xf32>
    %488 = arith.negf %487 : vector<2x16xf32>
    %489 = math.exp %488 : vector<2x16xf32>
    %cst_168 = arith.constant 1.000000e+00 : f32
    %490 = vector.broadcast %cst_168 : f32 to vector<2x16xf32>
    %491 = arith.addf %490, %489 : vector<2x16xf32>
    %492 = arith.divf %490, %491 : vector<2x16xf32>
    %493 = arith.mulf %484, %429 : vector<2x16xf32>
    %494 = arith.mulf %478, %486 : vector<2x16xf32>
    %495 = arith.addf %493, %494 : vector<2x16xf32>
    %496 = math.tanh %495 : vector<2x16xf32>
    %497 = arith.mulf %492, %496 : vector<2x16xf32>
    %498 = vector.extract_strided_slice %497 {offsets = [0, 0], sizes = [1, 16], strides = [1, 1]} : vector<2x16xf32> to vector<1x16xf32>
    %c6 = arith.constant 6 : index
    %c0_169 = arith.constant 0 : index
    %499 = vector.load %arg20[%c6, %c0_169] : memref<16x16xf32, #tpu.memory_space<vmem>>, vector<1x16xf32>
    tpu.vector_store %arg20[%c6, %c0_169], %498 {strides = array<i32>} : memref<16x16xf32, #tpu.memory_space<vmem>>, vector<1x16xf32>,
    %500 = vector.extract_strided_slice %497 {offsets = [1, 0], sizes = [1, 16], strides = [1, 1]} : vector<2x16xf32> to vector<1x16xf32>
    %c14 = arith.constant 14 : index
    %c0_170 = arith.constant 0 : index
    %501 = vector.load %arg20[%c14, %c0_170] : memref<16x16xf32, #tpu.memory_space<vmem>>, vector<1x16xf32>
    tpu.vector_store %arg20[%c14, %c0_170], %500 {strides = array<i32>} : memref<16x16xf32, #tpu.memory_space<vmem>>, vector<1x16xf32>,
    %502 = vector.extract_strided_slice %38 {offsets = [14, 0], sizes = [2, 64], strides = [1, 1]} : vector<16x64xf32> to vector<2x64xf32>
    %c0_171 = arith.constant 0 : index
    %c0_172 = arith.constant 0 : index
    %503 = vector.load %arg13[%c0_171, %c0_172] : memref<16x64xf32, #tpu.memory_space<vmem>>, vector<16x64xf32>
    %cst_173 = arith.constant dense<0.000000e+00> : vector<2x64xf32>
    %504 = tpu.matmul %464, %503, %cst_173 {dimension_numbers = #tpu.dot_dimension_numbers<[1], [0], [0], [1], [0, 0, 1, 1], [], []>} : vector<2x16xf32>, vector<16x64xf32>, vector<2x64xf32> -> vector<2x64xf32>
    %505 = arith.addf %502, %504 : vector<2x64xf32>
    %506 = vector.extract_strided_slice %505 {offsets = [0, 0], sizes = [2, 16], strides = [1, 1]} : vector<2x64xf32> to vector<2x16xf32>
    %507 = arith.negf %506 : vector<2x16xf32>
    %508 = math.exp %507 : vector<2x16xf32>
    %cst_174 = arith.constant 1.000000e+00 : f32
    %509 = vector.broadcast %cst_174 : f32 to vector<2x16xf32>
    %510 = arith.addf %509, %508 : vector<2x16xf32>
    %511 = arith.divf %509, %510 : vector<2x16xf32>
    %512 = vector.extract_strided_slice %505 {offsets = [0, 16], sizes = [2, 16], strides = [1, 1]} : vector<2x64xf32> to vector<2x16xf32>
    %513 = arith.negf %512 : vector<2x16xf32>
    %514 = math.exp %513 : vector<2x16xf32>
    %cst_175 = arith.constant 1.000000e+00 : f32
    %515 = vector.broadcast %cst_175 : f32 to vector<2x16xf32>
    %516 = arith.addf %515, %514 : vector<2x16xf32>
    %517 = arith.divf %515, %516 : vector<2x16xf32>
    %518 = vector.extract_strided_slice %505 {offsets = [0, 32], sizes = [2, 16], strides = [1, 1]} : vector<2x64xf32> to vector<2x16xf32>
    %519 = math.tanh %518 : vector<2x16xf32>
    %520 = vector.extract_strided_slice %505 {offsets = [0, 48], sizes = [2, 16], strides = [1, 1]} : vector<2x64xf32> to vector<2x16xf32>
    %521 = arith.negf %520 : vector<2x16xf32>
    %522 = math.exp %521 : vector<2x16xf32>
    %cst_176 = arith.constant 1.000000e+00 : f32
    %523 = vector.broadcast %cst_176 : f32 to vector<2x16xf32>
    %524 = arith.addf %523, %522 : vector<2x16xf32>
    %525 = arith.divf %523, %524 : vector<2x16xf32>
    %526 = arith.mulf %517, %462 : vector<2x16xf32>
    %527 = arith.mulf %511, %519 : vector<2x16xf32>
    %528 = arith.addf %526, %527 : vector<2x16xf32>
    %529 = math.tanh %528 : vector<2x16xf32>
    %530 = arith.mulf %525, %529 : vector<2x16xf32>
    %c0_177 = arith.constant 0 : index
    %c0_178 = arith.constant 0 : index
    %531 = vector.load %arg15[%c0_177, %c0_178] : memref<16x64xf32, #tpu.memory_space<vmem>>, vector<16x64xf32>
    %cst_179 = arith.constant dense<0.000000e+00> : vector<2x64xf32>
    %532 = tpu.matmul %530, %531, %cst_179 {dimension_numbers = #tpu.dot_dimension_numbers<[1], [0], [0], [1], [0, 0, 1, 1], [], []>} : vector<2x16xf32>, vector<16x64xf32>, vector<2x64xf32> -> vector<2x64xf32>
    %c0_180 = arith.constant 0 : index
    %c0_181 = arith.constant 0 : index
    %533 = vector.load %arg16[%c0_180, %c0_181] : memref<16x64xf32, #tpu.memory_space<vmem>>, vector<16x64xf32>
    %cst_182 = arith.constant dense<0.000000e+00> : vector<2x64xf32>
    %534 = tpu.matmul %497, %533, %cst_182 {dimension_numbers = #tpu.dot_dimension_numbers<[1], [0], [0], [1], [0, 0, 1, 1], [], []>} : vector<2x16xf32>, vector<16x64xf32>, vector<2x64xf32> -> vector<2x64xf32>
    %535 = arith.addf %532, %534 : vector<2x64xf32>
    %c0_183 = arith.constant 0 : index
    %c0_184 = arith.constant 0 : index
    %536 = vector.load %arg17[%c0_183, %c0_184] : memref<1x64xf32, #tpu.memory_space<vmem>>, vector<1x64xf32>
    %537 = vector.broadcast %536 : vector<1x64xf32> to vector<2x64xf32>
    %538 = arith.addf %535, %537 : vector<2x64xf32>
    %539 = vector.extract_strided_slice %538 {offsets = [0, 0], sizes = [2, 16], strides = [1, 1]} : vector<2x64xf32> to vector<2x16xf32>
    %540 = arith.negf %539 : vector<2x16xf32>
    %541 = math.exp %540 : vector<2x16xf32>
    %cst_185 = arith.constant 1.000000e+00 : f32
    %542 = vector.broadcast %cst_185 : f32 to vector<2x16xf32>
    %543 = arith.addf %542, %541 : vector<2x16xf32>
    %544 = arith.divf %542, %543 : vector<2x16xf32>
    %545 = vector.extract_strided_slice %538 {offsets = [0, 16], sizes = [2, 16], strides = [1, 1]} : vector<2x64xf32> to vector<2x16xf32>
    %546 = arith.negf %545 : vector<2x16xf32>
    %547 = math.exp %546 : vector<2x16xf32>
    %cst_186 = arith.constant 1.000000e+00 : f32
    %548 = vector.broadcast %cst_186 : f32 to vector<2x16xf32>
    %549 = arith.addf %548, %547 : vector<2x16xf32>
    %550 = arith.divf %548, %549 : vector<2x16xf32>
    %551 = vector.extract_strided_slice %538 {offsets = [0, 32], sizes = [2, 16], strides = [1, 1]} : vector<2x64xf32> to vector<2x16xf32>
    %552 = math.tanh %551 : vector<2x16xf32>
    %553 = vector.extract_strided_slice %538 {offsets = [0, 48], sizes = [2, 16], strides = [1, 1]} : vector<2x64xf32> to vector<2x16xf32>
    %554 = arith.negf %553 : vector<2x16xf32>
    %555 = math.exp %554 : vector<2x16xf32>
    %cst_187 = arith.constant 1.000000e+00 : f32
    %556 = vector.broadcast %cst_187 : f32 to vector<2x16xf32>
    %557 = arith.addf %556, %555 : vector<2x16xf32>
    %558 = arith.divf %556, %557 : vector<2x16xf32>
    %559 = arith.mulf %550, %495 : vector<2x16xf32>
    %560 = arith.mulf %544, %552 : vector<2x16xf32>
    %561 = arith.addf %559, %560 : vector<2x16xf32>
    %562 = math.tanh %561 : vector<2x16xf32>
    %563 = arith.mulf %558, %562 : vector<2x16xf32>
    %564 = vector.extract_strided_slice %563 {offsets = [0, 0], sizes = [1, 16], strides = [1, 1]} : vector<2x16xf32> to vector<1x16xf32>
    %c7 = arith.constant 7 : index
    %c0_188 = arith.constant 0 : index
    %565 = vector.load %arg20[%c7, %c0_188] : memref<16x16xf32, #tpu.memory_space<vmem>>, vector<1x16xf32>
    tpu.vector_store %arg20[%c7, %c0_188], %564 {strides = array<i32>} : memref<16x16xf32, #tpu.memory_space<vmem>>, vector<1x16xf32>,
    %566 = vector.extract_strided_slice %563 {offsets = [1, 0], sizes = [1, 16], strides = [1, 1]} : vector<2x16xf32> to vector<1x16xf32>
    %c15 = arith.constant 15 : index
    %c0_189 = arith.constant 0 : index
    %567 = vector.load %arg20[%c15, %c0_189] : memref<16x16xf32, #tpu.memory_space<vmem>>, vector<1x16xf32>
    tpu.vector_store %arg20[%c15, %c0_189], %566 {strides = array<i32>} : memref<16x16xf32, #tpu.memory_space<vmem>>, vector<1x16xf32>,
    return
  }
  func.func @transform_0(%arg0: i32) -> (i32, i32) {
    %c0_i32 = arith.constant 0 : i32
    %c0_i32_0 = arith.constant 0 : i32
    %c0_i32_1 = arith.constant 0 : i32
    return %c0_i32, %c0_i32_0 : i32, i32
  }
  func.func @transform_1(%arg0: i32) -> (i32, i32) {
    %c0_i32 = arith.constant 0 : i32
    %c0_i32_0 = arith.constant 0 : i32
    %c0_i32_1 = arith.constant 0 : i32
    return %c0_i32, %c0_i32_0 : i32, i32
  }
  func.func @transform_2(%arg0: i32) -> (i32, i32) {
    %c0_i32 = arith.constant 0 : i32
    %c0_i32_0 = arith.constant 0 : i32
    %c0_i32_1 = arith.constant 0 : i32
    return %c0_i32, %c0_i32_0 : i32, i32
  }
  func.func @transform_3(%arg0: i32) -> (i32, i32) {
    %c0_i32 = arith.constant 0 : i32
    %c0_i32_0 = arith.constant 0 : i32
    %c0_i32_1 = arith.constant 0 : i32
    return %c0_i32, %c0_i32_0 : i32, i32
  }
  func.func @transform_4(%arg0: i32) -> (i32, i32) {
    %c0_i32 = arith.constant 0 : i32
    %c0_i32_0 = arith.constant 0 : i32
    %c0_i32_1 = arith.constant 0 : i32
    return %c0_i32, %c0_i32_0 : i32, i32
  }
  func.func @transform_5(%arg0: i32) -> (i32, i32) {
    %c0_i32 = arith.constant 0 : i32
    %c0_i32_0 = arith.constant 0 : i32
    %c0_i32_1 = arith.constant 0 : i32
    return %c0_i32, %c0_i32_0 : i32, i32
  }
  func.func @transform_6(%arg0: i32) -> (i32, i32) {
    %c0_i32 = arith.constant 0 : i32
    %c0_i32_0 = arith.constant 0 : i32
    %c0_i32_1 = arith.constant 0 : i32
    return %c0_i32, %c0_i32_0 : i32, i32
  }
  func.func @transform_7(%arg0: i32) -> (i32, i32) {
    %c0_i32 = arith.constant 0 : i32
    %c0_i32_0 = arith.constant 0 : i32
    %c0_i32_1 = arith.constant 0 : i32
    return %c0_i32, %c0_i32_0 : i32, i32
  }
  func.func @transform_8(%arg0: i32) -> (i32, i32) {
    %c0_i32 = arith.constant 0 : i32
    %c0_i32_0 = arith.constant 0 : i32
    %c0_i32_1 = arith.constant 0 : i32
    return %c0_i32, %c0_i32_0 : i32, i32
  }
  func.func @transform_9(%arg0: i32) -> (i32, i32) {
    %c0_i32 = arith.constant 0 : i32
    %c0_i32_0 = arith.constant 0 : i32
    %c0_i32_1 = arith.constant 0 : i32
    return %c0_i32, %c0_i32_0 : i32, i32
  }
  func.func @transform_10(%arg0: i32) -> (i32, i32) {
    %c0_i32 = arith.constant 0 : i32
    %c0_i32_0 = arith.constant 0 : i32
    %c0_i32_1 = arith.constant 0 : i32
    return %c0_i32, %c0_i32_0 : i32, i32
  }
  func.func @transform_11(%arg0: i32) -> (i32, i32) {
    %c0_i32 = arith.constant 0 : i32
    %c0_i32_0 = arith.constant 0 : i32
    %c0_i32_1 = arith.constant 0 : i32
    return %c0_i32, %c0_i32_0 : i32, i32
  }
  func.func @transform_12(%arg0: i32) -> (i32, i32) {
    %c0_i32 = arith.constant 0 : i32
    %c0_i32_0 = arith.constant 0 : i32
    %c0_i32_1 = arith.constant 0 : i32
    return %c0_i32, %c0_i32_0 : i32, i32
  }
  func.func @transform_13(%arg0: i32) -> (i32, i32) {
    %c0_i32 = arith.constant 0 : i32
    %c0_i32_0 = arith.constant 0 : i32
    %c0_i32_1 = arith.constant 0 : i32
    return %c0_i32, %c0_i32_0 : i32, i32
  }
  func.func @transform_14(%arg0: i32) -> (i32, i32) {
    %c0_i32 = arith.constant 0 : i32
    %c0_i32_0 = arith.constant 0 : i32
    %c0_i32_1 = arith.constant 0 : i32
    return %c0_i32, %c0_i32_0 : i32, i32
  }
  func.func @transform_15(%arg0: i32) -> (i32, i32) {
    %c0_i32 = arith.constant 0 : i32
    %c0_i32_0 = arith.constant 0 : i32
    %c0_i32_1 = arith.constant 0 : i32
    return %c0_i32, %c0_i32_0 : i32, i32
  }
  func.func @transform_16(%arg0: i32) -> (i32, i32) {
    %c0_i32 = arith.constant 0 : i32
    %c0_i32_0 = arith.constant 0 : i32
    %c0_i32_1 = arith.constant 0 : i32
    return %c0_i32, %c0_i32_0 : i32, i32
  }
  func.func @transform_17(%arg0: i32) -> (i32, i32) {
    %c0_i32 = arith.constant 0 : i32
    %c0_i32_0 = arith.constant 0 : i32
    %c0_i32_1 = arith.constant 0 : i32
    return %c0_i32, %c0_i32_0 : i32, i32
  }
  func.func @transform_18(%arg0: i32) -> (i32, i32) {
    %c0_i32 = arith.constant 0 : i32
    %c0_i32_0 = arith.constant 0 : i32
    %c0_i32_1 = arith.constant 0 : i32
    return %c0_i32, %c0_i32_0 : i32, i32
  }
  func.func @transform_19(%arg0: i32) -> (i32, i32) {
    %c0_i32 = arith.constant 0 : i32
    %c0_i32_0 = arith.constant 0 : i32
    %c0_i32_1 = arith.constant 0 : i32
    return %c0_i32, %c0_i32_0 : i32, i32
  }
}

</mosaic_0001>

<bundles_post_ra>
// kernel: tpu_custom_call.1
= control target key start
LH: loop header
LB: loop body
LE: loop exit
PB: predicated region body
PF: predicated region fallthrough
CT: control target
= control target key end

     0   :  { %s4788_s0 = inlined_call_operand.vmem [shape: f32[16,12], index: 0, kind: input, shape index: {}]   ;;  %s4789_s1 = inlined_call_operand.vmem [shape: f32[16,1], index: 1, kind: input, shape index: {}]   ;;  %s4790_s2 = inlined_call_operand.hbm [shape: f32[12,32], index: 2, kind: input, shape index: {}]   ;;  %s4791_s3 = inlined_call_operand.vmem [shape: f32[1,32], index: 3, kind: input, shape index: {}]   ;;  %s4792_s4 = inlined_call_operand.hbm [shape: f32[16,16], index: 4, kind: input, shape index: {}]   ;;  %s4793_s5 = inlined_call_operand.hbm [shape: f32[16,16], index: 5, kind: input, shape index: {}]   ;;  %s4794_s6 = inlined_call_operand.hbm [shape: f32[32,48], index: 6, kind: input, shape index: {}]   ;;  %s4795_s7 = inlined_call_operand.hbm [shape: f32[32,48], index: 7, kind: input, shape index: {}]   ;;  %s4796_s8 = inlined_call_operand.hbm [shape: f32[32,48], index: 8, kind: input, shape index: {}]   ;;  %s4797_s9 = inlined_call_operand.hbm [shape: f32[1,48], index: 9, kind: input, shape index: {}]   ;;  %s4798_s10 = inlined_call_operand.vmem [shape: f32[16,16], index: 10, kind: input, shape index: {}]   ;;  %s4799_s11 = inlined_call_operand.hbm [shape: f32[16,64], index: 11, kind: input, shape index: {}]   ;;  %s4800_s12 = inlined_call_operand.hbm [shape: f32[16,64], index: 12, kind: input, shape index: {}]   ;;  %s4801_s13 = inlined_call_operand.vmem [shape: f32[1,64], index: 13, kind: input, shape index: {}]   ;;  %s4802_s14 = inlined_call_operand.hbm [shape: f32[16,64], index: 14, kind: input, shape index: {}]   ;;  %s4803_s15 = inlined_call_operand.hbm [shape: f32[16,64], index: 15, kind: input, shape index: {}]   ;;  %s4804_s16 = inlined_call_operand.vmem [shape: f32[1,64], index: 16, kind: input, shape index: {}]   ;;  %s4805_s17 = inlined_call_operand.hbm [shape: f32[16,32], index: 17, kind: output, shape index: {0}]   ;;  %s4806_s18 = inlined_call_operand.hbm [shape: f32[16,16], index: 18, kind: output, shape index: {1}]   ;;  %s4807_s19 = inlined_call_operand.hbm [shape: f32[16,16], index: 19, kind: output, shape index: {2}]  }
   0x1   :  { %4810 = sst [smem:[#allocation32_spill]] %s4788_s0 }
   0x2   :  { %4811 = sst [smem:[#allocation33_spill]] %s4789_s1 }
   0x3   :  { %4812 = sst [smem:[#allocation34_spill]] %s4790_s2 }
   0x4   :  { %4813 = sst [smem:[#allocation35_spill]] %s4791_s3 }
   0x5   :  { %25 = vsyncpa [#allocation3], 0 }
   0x6   :  { %26 = vsyncpa [#allocation6], 0 }
   0x7   :  { %27 = vsyncpa [#allocation9], 0 }
   0x8   :  { %28 = vsyncpa [#allocation12], 0 }
   0x9   :  { %29 = vsyncpa [#allocation15], 0 }
   0xa   :  { %30 = vsyncpa [#allocation18], 0 }
   0xb   :  { %31 = vsyncpa [#allocation4], 0 }
   0xc   :  { %32 = vsyncpa [#allocation22], 0  ;;  %s4206_s0 = smov [#allocation5]   ;;  %s4207_s20 = smov [#allocation8]  }
   0xd   :  { %s56_s30 = sshll.u32 %s4206_s0, 4  ;;  %s80_s21 = sshll.u32 %s4207_s20, 4  ;;  %s57_s30 = int_to_ptr.vmem [resolvable:$true] %s56_s30  ;;  %s81_s21 = int_to_ptr.vmem [resolvable:$true] %s80_s21 }
   0xe   :  { %s3918_s1 = scalar_lea.vmem %s57_s30, 256  ;;  %p3923_p1 = scmp.lt.s32.totalorder %s57_s30, %s57_s30 }
   0xf   :  { %p3919_p0 = scmp.ne.s32.totalorder %s57_s30, %s3918_s1  ;;  %p3924_p2 = scmp.lt.s32.totalorder %s3918_s1, %s3918_s1 }
  0x11   :  { %p3925_p3 = por %p3924_p2, %p3923_p1 }
  0x13   :  { %p3926_p4 = pnand %p3925_p3, %p3919_p0 }
  0x15   :  { %3929 = shalt.err (!%p3926_p4)
}
  0x16   :  { %s4208_s22 = smov 128   ;;  %s4209_s2 = smov 8  }
  0x17   :  { %62 = dma.hbm_to_vmem [thread:$0]  %s4792_s4, 256, %s57_s30, [#allocation6], %s4208_s22, %s4208_s22, %s4209_s2  }
  0x18   :  { %s3938_s25 = scalar_lea.vmem %s81_s21, 512  ;;  %p3943_p6 = scmp.lt.s32.totalorder %s81_s21, %s81_s21 }
  0x19   :  { %p3939_p5 = scmp.ne.s32.totalorder %s81_s21, %s3938_s25  ;;  %p3944_p7 = scmp.lt.s32.totalorder %s3938_s25, %s3938_s25 }
  0x1b   :  { %p3945_p8 = por %p3944_p7, %p3943_p6 }
  0x1d   :  { %p3946_p9 = pnand %p3945_p8, %p3939_p5 }
  0x1f   :  { %3949 = shalt.err (!%p3946_p9)
}
  0x20   :  { %86 = dma.hbm_to_vmem [thread:$0]  %s4794_s6, 512, %s81_s21, [#allocation9], %s4208_s22, %s4208_s22, %s4209_s2  }
  0x21   :  { %s4210_s27 = smov [#allocation11]   ;;  %s4211_s29 = smov [#allocation14]  }
  0x22   :  { %s104_s28 = sshll.u32 %s4210_s27, 4  ;;  %s128_s0 = sshll.u32 %s4211_s29, 4  ;;  %s105_s28 = int_to_ptr.vmem [resolvable:$true] %s104_s28  ;;  %s129_s0 = int_to_ptr.vmem [resolvable:$true] %s128_s0 }
  0x23   :  { %s3958_s4 = scalar_lea.vmem %s105_s28, 512  ;;  %p3963_p11 = scmp.lt.s32.totalorder %s105_s28, %s105_s28 }
  0x24   :  { %p3959_p10 = scmp.ne.s32.totalorder %s105_s28, %s3958_s4  ;;  %p3964_p12 = scmp.lt.s32.totalorder %s3958_s4, %s3958_s4 }
  0x26   :  { %p3965_p13 = por %p3964_p12, %p3963_p11 }
  0x28   :  { %p3966_p0 = pnand %p3965_p13, %p3959_p10 }
  0x2a   :  { %3969 = shalt.err (!%p3966_p0)
}
  0x2b   :  { %110 = dma.hbm_to_vmem [thread:$0]  %s4796_s8, 512, %s105_s28, [#allocation12], %s4208_s22, %s4208_s22, %s4209_s2  }
  0x2c   :  { %s3978_s6 = scalar_lea.vmem %s129_s0, 256  ;;  %p3983_p2 = scmp.lt.s32.totalorder %s129_s0, %s129_s0 }
  0x2d   :  { %p3979_p1 = scmp.ne.s32.totalorder %s129_s0, %s3978_s6  ;;  %p3984_p3 = scmp.lt.s32.totalorder %s3978_s6, %s3978_s6 }
  0x2f   :  { %p3985_p4 = por %p3984_p3, %p3983_p2 }
  0x31   :  { %p3986_p5 = pnand %p3985_p4, %p3979_p1 }
  0x33   :  { %3989 = shalt.err (!%p3986_p5)
}
  0x34   :  { %134 = dma.hbm_to_vmem [thread:$0]  %s4799_s11, 256, %s129_s0, [#allocation15], %s4208_s22, %s4208_s22, %s4209_s2  }
  0x35   :  { %s4212_s23 = smov [#allocation17]   ;;  %s4213_s25 = smov [#allocation2]  }
  0x36   :  { %s154_s24 = sshll.u32 %s4212_s23, 4  ;;  %s42_s3 = sshll.u32 %s4213_s25, 4  ;;  %s155_s24 = int_to_ptr.vmem [resolvable:$true] %s154_s24  ;;  %s43_s3 = int_to_ptr.vmem [resolvable:$true] %s42_s3 }
  0x37   :  { %s3998_s8 = scalar_lea.vmem %s155_s24, 256  ;;  %p4003_p7 = scmp.lt.s32.totalorder %s155_s24, %s155_s24 }
  0x38   :  { %p3999_p6 = scmp.ne.s32.totalorder %s155_s24, %s3998_s8  ;;  %p4004_p8 = scmp.lt.s32.totalorder %s3998_s8, %s3998_s8 }
  0x3a   :  { %p4005_p9 = por %p4004_p8, %p4003_p7 }
  0x3c   :  { %p4006_p10 = pnand %p4005_p9, %p3999_p6 }
  0x3e   :  { %4009 = shalt.err (!%p4006_p10)
}
  0x3f   :  { %160 = dma.hbm_to_vmem [thread:$0]  %s4802_s14, 256, %s155_s24, [#allocation18], %s4208_s22, %s4208_s22, %s4209_s2  }
  0x40   :  { %s4018_s11 = scalar_lea.vmem %s43_s3, 256  ;;  %p4023_p12 = scmp.lt.s32.totalorder %s43_s3, %s43_s3 }
  0x41   :  { %p4019_p11 = scmp.ne.s32.totalorder %s43_s3, %s4018_s11  ;;  %p4024_p13 = scmp.lt.s32.totalorder %s4018_s11, %s4018_s11 }
  0x43   :  { %p4025_p0 = por %p4024_p13, %p4023_p12 }
  0x45   :  { %p4026_p1 = pnand %p4025_p0, %p4019_p11 }
  0x47   :  { %4029 = shalt.err (!%p4026_p1)
}
  0x48   :  { %s4814_s0 = sld [smem:[#allocation34_spill]]  ;;  %s4214_s4 = smov [#allocation7]  }
  0x49   :  { %s68_s30 = sshll.u32 %s4214_s4, 4  ;;  %s4215_s20 = smov [#allocation10]   ;;  %s69_s30 = int_to_ptr.vmem [resolvable:$true] %s68_s30 }
  0x4a   :  { %s92_s6 = sshll.u32 %s4215_s20, 4  ;;  %s4038_s14 = scalar_lea.vmem %s69_s30, 256  ;;  %s93_s6 = int_to_ptr.vmem [resolvable:$true] %s92_s6 }
  0x4b   :  { %p4039_p2 = scmp.ne.s32.totalorder %s69_s30, %s4038_s14  ;;  %p4043_p3 = scmp.lt.s32.totalorder %s69_s30, %s69_s30 }
  0x4c   :  { %p4044_p4 = scmp.lt.s32.totalorder %s4038_s14, %s4038_s14 }
  0x4e   :  { %48 = dma.hbm_to_vmem [thread:$0]  %s4814_s0, 256, %s43_s3, [#allocation3], %s4208_s22, %s4208_s22, %s4209_s2  }
  0x4f   :  { %p4045_p5 = por %p4044_p4, %p4043_p3 }
  0x51   :  { %p4046_p6 = pnand %p4045_p5, %p4039_p2 }
  0x53   :  { %4049 = shalt.err (!%p4046_p6)
}
  0x54   :  { %74 = dma.hbm_to_vmem [thread:$0]  %s4793_s5, 256, %s69_s30, [#allocation6], %s4208_s22, %s4208_s22, %s4209_s2  }
  0x55   :  { %s4058_s23 = scalar_lea.vmem %s93_s6, 512  ;;  %p4063_p8 = scmp.lt.s32.totalorder %s93_s6, %s93_s6 }
  0x56   :  { %p4059_p7 = scmp.ne.s32.totalorder %s93_s6, %s4058_s23  ;;  %p4064_p9 = scmp.lt.s32.totalorder %s4058_s23, %s4058_s23 }
  0x58   :  { %p4065_p10 = por %p4064_p9, %p4063_p8 }
  0x5a   :  { %p4066_p11 = pnand %p4065_p10, %p4059_p7 }
  0x5c   :  { %4069 = shalt.err (!%p4066_p11)
}
  0x5d   :  { %98 = dma.hbm_to_vmem [thread:$0]  %s4795_s7, 512, %s93_s6, [#allocation9], %s4208_s22, %s4208_s22, %s4209_s2  }
  0x5e   :  { %s4216_s3 = smov [#allocation13]   ;;  %s4217_s26 = smov [#allocation16]  }
  0x5f   :  { %s117_s8 = sshll.u32 %s4216_s3, 4  ;;  %s140_s27 = sshll.u32 %s4217_s26, 4  ;;  %s118_s8 = int_to_ptr.vmem [resolvable:$true] %s117_s8  ;;  %s141_s27 = int_to_ptr.vmem [resolvable:$true] %s140_s27 }
  0x60   :  { %s4078_s5 = scalar_lea.vmem %s118_s8, 16  ;;  %s4082_s11 = scalar_lea.vmem %s118_s8, 32 }
  0x61   :  { %p4079_p12 = scmp.ne.s32.totalorder %s118_s8, %s4078_s5  ;;  %p4083_p13 = scmp.lt.s32.totalorder %s118_s8, %s118_s8 }
  0x62   :  { %p4084_p0 = scmp.lt.s32.totalorder %s4082_s11, %s4078_s5 }
  0x64   :  { %p4085_p1 = por %p4084_p0, %p4083_p13 }
  0x66   :  { %p4086_p2 = pnand %p4085_p1, %p4079_p12 }
  0x68   :  { %4089 = shalt.err (!%p4086_p2)
}
  0x69   :  { %120 = dma.hbm_to_vmem [thread:$0]  %s4797_s9, 16, %s118_s8, [#allocation12]  }
  0x6a   :  { %s4098_s0 = scalar_lea.vmem %s141_s27, 256  ;;  %p4103_p4 = scmp.lt.s32.totalorder %s141_s27, %s141_s27 }
  0x6b   :  { %p4099_p3 = scmp.ne.s32.totalorder %s141_s27, %s4098_s0  ;;  %p4104_p5 = scmp.lt.s32.totalorder %s4098_s0, %s4098_s0 }
  0x6d   :  { %p4105_p6 = por %p4104_p5, %p4103_p4 }
  0x6f   :  { %p4106_p7 = pnand %p4105_p6, %p4099_p3 }
  0x71   :  { %4109 = shalt.err (!%p4106_p7)
}
  0x72   :  { %146 = dma.hbm_to_vmem [thread:$0]  %s4800_s12, 256, %s141_s27, [#allocation15], %s4208_s22, %s4208_s22, %s4209_s2  }
  0x73   :  { %s4218_s30 = smov [#allocation19]  }
  0x74   :  { %s166_s20 = sshll.u32 %s4218_s30, 4  ;;  %s167_s20 = int_to_ptr.vmem [resolvable:$true] %s166_s20 }
  0x75   :  { %s4118_s6 = scalar_lea.vmem %s167_s20, 256  ;;  %p4123_p9 = scmp.lt.s32.totalorder %s167_s20, %s167_s20 }
  0x76   :  { %p4119_p8 = scmp.ne.s32.totalorder %s167_s20, %s4118_s6  ;;  %p4124_p10 = scmp.lt.s32.totalorder %s4118_s6, %s4118_s6 }
  0x78   :  { %p4125_p11 = por %p4124_p10, %p4123_p9 }
  0x7a   :  { %p4126_p12 = pnand %p4125_p11, %p4119_p8 }
  0x7c   :  { %4129 = shalt.err (!%p4126_p12)
}
  0x7d   :  { %172 = dma.hbm_to_vmem [thread:$0]  %s4803_s15, 256, %s167_s20, [#allocation18], %s4208_s22, %s4208_s22, %s4209_s2  }
  0x7e   :  { %4190 = dma.done.wait [#allocation3], 256  }
  0x7f   :  { %4191 = vsyncadd [#allocation3], 4294967040 }
  0x80   :  { %4192 = dma.done.wait [#allocation6], 512  }
  0x81   :  { %4193 = vsyncadd [#allocation6], 4294966784 }
  0x82   :  { %4194 = dma.done.wait [#allocation9], 1024  }
  0x83   :  { %4195 = vsyncadd [#allocation9], 4294966272 }
  0x84   :  { %4196 = dma.done.wait [#allocation12], 528  }
  0x85   :  { %4197 = vsyncadd [#allocation12], 4294966768 }
  0x86   :  { %4198 = dma.done.wait [#allocation15], 512  }
  0x87   :  { %4199 = vsyncadd [#allocation15], 4294966784 }
  0x88   :  { %4200 = dma.done.wait [#allocation18], 512  }
  0x89   :  { %4201 = vsyncadd [#allocation18], 4294966784  ;;  %v4219_v0 = vmov 0   ;;  %vm226_vm0 = vcmask 1043456   ;;  %vm219_vm1 = vcmask 97280   ;;  %v210_v2 = vld [vmem:[#allocation2] sm:$0xff] }
  0x8a   :  { %3775 = vset.pattern.permute.xlu0 %v4219_v0  ;;  %v211_v1 = vld [vmem:[#allocation2 + $0x8] sm:$0xf]  ;;  %s4815_s21 = sld [smem:[#allocation32_spill]]  ;;  %v322_v7 = vld [vmem:[#allocation5] sm:$0xff]  ;;  %vm324_vm2 = vcmask 130048   ;;  %v406_v8 = vld [vmem:[#allocation7] sm:$0xff] }
  0x8b   :  { %3515 = vmatprep.subr.msk.mxu0 %vm226_vm0, %v211_v1  ;;  %s4816_s24 = sld [smem:[#allocation33_spill]]  ;;  %3526 = vmatprep.mubr.msk.f32.mxu1 %vm324_vm2, %v322_v7  ;;  %vm319_vm3 = vcmask 261120   ;;  %v323_v18 = vld [vmem:[#allocation5 + $0x8] sm:$0xff]  ;;  %v407_v19 = vld [vmem:[#allocation7 + $0x8] sm:$0xff]  ;;  %v491_v22 = vld [vmem:[#allocation8 + $0x10] sm:$0xff]  ;;  %s4220_s28 = smov 96  }
  0x8c   :  { %3516 = vmatpush3.msk.msra.mxu0 %vm226_vm0, %v211_v1  ;;  %s4817_s11 = sld [smem:[#allocation35_spill]]  ;;  %v492_v20 = vld [vmem:[#allocation8 + $0x18] sm:$0xff]  ;;  %v495_v23 = vld [vmem:[#allocation10 + $0x10] sm:$0xff]  ;;  %v490_v24 = vld [vmem:[#allocation8 + $0x8] sm:$0xff]  ;;  %s4221_s29 = smov 112   ;;  %v4222_v63 = vmov 0.0  }
  0x8d   :  { %3517 = vmatprep.subr.mxu0 %v210_v2  ;;  %v496_v21 = vld [vmem:[#allocation10 + $0x18] sm:$0xff]  ;;  %v494_v25 = vld [vmem:[#allocation10 + $0x8] sm:$0xff]  ;;  %v489_v26 = vld [vmem:[#allocation8] sm:$0xff]  ;;  %vm4223_vm4 = vmmov 0   ;;  %s4225_s6 = smov 32   ;;  %s4226_s9 = smov 80  }
  0x8e   :  { %3518 = vmatpush3.msra.mxu0 %v210_v2  ;;  %v493_v27 = vld [vmem:[#allocation10] sm:$0xff]  ;;  %v662_v28 = vld [vmem:[#allocation11 + $0x18] sm:$0xff]  ;;  %v661_v33 = vld [vmem:[#allocation11 + $0x10] sm:$0xff]  ;;  %vm1235_vm5 = vcmask 122880   ;;  %vm1237_vm6 = vcmask 123905   ;;  %s4228_s23 = smov [#allocation20]  }
  0x8f   :  { %v660_v34 = vld [vmem:[#allocation11 + $0x8] sm:$0xff]  ;;  %v659_v35 = vld [vmem:[#allocation11] sm:$0xff]  ;;  %v777_v49 = vld [vmem:[%s4798_s10] sm:$0xff] }
  0x90   :  { %v208_v3 = vld [vmem:[%s4815_s21] sm:$0xff]  ;;  %v209_v5 = vld [vmem:[%s4815_s21 + $0x8] sm:$0xff]  ;;  %v3353_v42 = vld [vmem:[#allocation13] ss:$0 sm:$0xff] }
  0x91   :  { %3519 = vmatprep.mubr.msk.f32.mxu0 %vm219_vm1, %v208_v3  ;;  %v306_v4 = vld [vmem:[%s4816_s24 + $0x8] sm:$0xff]  ;;  %v305_v6 = vld [vmem:[%s4816_s24] sm:$0xff]  ;;  %v860_v62 = vld [vmem:[#allocation14] sm:$0xff]  ;;  %s3291_s24 = sshll.u32 %s4228_s23, 4  ;;  %s3292_s24 = int_to_ptr.vmem [resolvable:$true] %s3291_s24 }
  0x92   :  { %314 = vperm.xlu0 %3775, %v306_v4   ;;  %3520 = vmatmul.mubr.msk.f32.vlgmr.msra.gmra.mxu0 %vm219_vm1, %v209_v5  ;;  %v3339_v10 = vld [vmem:[%s4817_s11] ss:$0 sm:$0xff]  ;;  %v778_v60 = vld [vmem:[%s4798_s10 + $0x8] sm:$0xff] }
  0x93   :  { %3533 = vmatprep.mubr.msk.f32.mxu0 %vm324_vm2, %v406_v8  ;;  %v861_v61 = vld [vmem:[#allocation14 + $0x8] sm:$0xff]  ;;  %v4433_v0 = vld [vmem:[#allocation16 + $0x8] sm:$0xff]  ;;  %v4437_v1 = vld [vmem:[#allocation16] sm:$0xff] }
  0x96   :  { %309 = vperm.xlu0 %3775, %v305_v6   ;;  %v3356_v6 = vld [vmem:[%s4801_s13] ss:$0 sm:$0xff]  ;;  %s4224_s13 = smov 16  }
 0x10d   :  { %v315_v9 = vpop.permute.xlu0 %314 }
 0x111   :  { %v310_v16 = vpop.permute.xlu0 %309 }
 0x152   :  { %v3521_v11 = vpop.f32.mrf.mxu0 }
 0x153   :  { %v302_v12 = vadd.f32 %v3521_v11, %v3339_v10 }
 0x154   :  { %v296_v13 = vpop.f32.mrf.mxu0 }
 0x155   :  { %v318_v14 = vmul.f32 %v315_v9, %v302_v12  ;;  %v297_v15 = vadd.f32 %v3339_v10, %v296_v13 }
 0x157   :  { %v317_v17 = vmul.f32 %v310_v16, %v297_v15  ;;  %3522 = vmatprep.subr.mxu1 %v318_v14  ;;  %3529 = vmatprep.subr.mxu0 %v318_v14  ;;  %321 = vst.msk [vmem:[#allocation20 + $0x8] sm:$0xff] %vm319_vm3, %v318_v14 }
 0x158   :  { %3523 = vmatpush3.msra.mxu1 %v318_v14  ;;  %3530 = vmatpush3.msra.mxu0 %v318_v14 }
 0x159   :  { %3524 = vmatprep.subr.mxu1 %v317_v17  ;;  %3531 = vmatprep.subr.mxu0 %v317_v17  ;;  %320 = vst.msk [vmem:[#allocation20] sm:$0xff] %vm319_vm3, %v317_v17 }
 0x15a   :  { %3525 = vmatpush3.msra.mxu1 %v317_v17  ;;  %3532 = vmatpush3.msra.mxu0 %v317_v17 }
 0x15b   :  { %3527 = vmatmul.mubr.msk.f32.vlgmr.msra.gmra.mxu1 %vm324_vm2, %v323_v18  ;;  %3534 = vmatmul.mubr.msk.f32.vlgmr.msra.gmra.mxu0 %vm324_vm2, %v407_v19 }
 0x15c   :  { %3547 = vmatprep.subr.mxu0 %v492_v20  ;;  %3555 = vmatprep.mubr.msk.f32.mxu0 %vm319_vm3, %v317_v17 }
 0x15d   :  { %3548 = vmatpush3.msra.mxu0 %v492_v20  ;;  %3536 = vmatprep.subr.mxu1 %v496_v21 }
 0x15e   :  { %3549 = vmatprep.subr.mxu0 %v491_v22  ;;  %3537 = vmatpush3.msra.mxu1 %v496_v21 }
 0x15f   :  { %3550 = vmatpush3.msra.mxu0 %v491_v22  ;;  %3538 = vmatprep.subr.mxu1 %v495_v23  ;;  %v4464_v22 = vld [vmem:[#allocation19 + $0x8] sm:$0xff] }
 0x160   :  { %3551 = vmatprep.subr.mxu0 %v490_v24  ;;  %3539 = vmatpush3.msra.mxu1 %v495_v23  ;;  %v4466_v23 = vld [vmem:[#allocation19] sm:$0xff] }
 0x161   :  { %3552 = vmatpush3.msra.mxu0 %v490_v24  ;;  %3540 = vmatprep.subr.mxu1 %v494_v25  ;;  %v4468_v24 = vld [vmem:[#allocation17 + $0x8] sm:$0xff] }
 0x162   :  { %3553 = vmatprep.subr.mxu0 %v489_v26  ;;  %3541 = vmatpush3.msra.mxu1 %v494_v25  ;;  %v4472_v25 = vld [vmem:[#allocation17] sm:$0xff] }
 0x163   :  { %3554 = vmatpush3.msra.mxu0 %v489_v26  ;;  %3542 = vmatprep.subr.mxu1 %v493_v27 }
 0x164   :  { %3556 = vmatmul.mubr.msk.f32.vlgmr.msra.gmra.mxu0 %vm319_vm3, %v318_v14  ;;  %3543 = vmatpush3.msra.mxu1 %v493_v27 }
 0x165   :  { %3558 = vmatprep.subr.mxu1 %v662_v28  ;;  %3573 = vmatprep.mubr.msk.f32.mxu0 %vm324_vm2, %v777_v49 }
 0x21b   :  { %v3528_v29 = vpop.f32.mrf.mxu1  ;;  %v3535_v30 = vpop.f32.mrf.mxu0 }
 0x21d   :  { %v397_v31 = vpop.f32.mrf.mxu1  ;;  %v480_v32 = vpop.f32.mrf.mxu0 }
 0x21e   :  { %3544 = vmatprep.mubr.msk.f32.mxu1 %vm319_vm3, %v397_v31 }
 0x21f   :  { %3545 = vmatmul.mubr.msk.f32.vlgmr.msra.gmra.mxu1 %vm319_vm3, %v3528_v29 }
 0x220   :  { %3559 = vmatpush3.msra.mxu1 %v662_v28  ;;  %3566 = vmatprep.mubr.msk.f32.mxu1 %vm319_vm3, %v480_v32 }
 0x221   :  { %3560 = vmatprep.subr.mxu1 %v661_v33 }
 0x222   :  { %3561 = vmatpush3.msra.mxu1 %v661_v33  ;;  %v4506_v33 = vld [vmem:[%s4804_s16] ss:$0 sm:$0xff] }
 0x223   :  { %3562 = vmatprep.subr.mxu1 %v660_v34 }
 0x224   :  { %3563 = vmatpush3.msra.mxu1 %v660_v34  ;;  %v3557_v37 = vpop.f32.mrf.mxu0 }
 0x225   :  { %3564 = vmatprep.subr.mxu1 %v659_v35 }
 0x226   :  { %3565 = vmatpush3.msra.mxu1 %v659_v35  ;;  %v650_v40 = vpop.f32.mrf.mxu0 }
 0x227   :  { %3567 = vmatmul.mubr.msk.f32.vlgmr.msra.gmra.mxu1 %vm319_vm3, %v3535_v30  ;;  %3583 = vmatprep.subr.mxu1 %v4222_v63 }
 0x228   :  { %3584 = vmatpush3.msra.mxu1 %v4433_v0  ;;  %3587 = vmatprep.mubr.msk.f32.mxu1 %vm4223_vm4, %v4222_v63 }
 0x229   :  { %3585 = vmatprep.subr.mxu1 %v4222_v63 }
 0x22a   :  { %3586 = vmatpush3.msra.mxu1 %v4437_v1 }
 0x22b   :  { %3588 = vmatmul.mubr.f32.vlgmr.msra.gmra.mxu1 %v4222_v63  ;;  %3597 = vmatprep.subr.mxu1 %v4222_v63 }
 0x22c   :  { %3601 = vmatprep.mubr.msk.f32.mxu1 %vm4223_vm4, %v4222_v63  ;;  %3598 = vmatpush3.msra.mxu1 %v4468_v24 }
 0x22d   :  { %3599 = vmatprep.subr.mxu1 %v4222_v63 }
 0x22e   :  { %3600 = vmatpush3.msra.mxu1 %v4472_v25 }
 0x22f   :  { %3611 = vmatprep.subr.mxu1 %v4222_v63 }
 0x2df   :  { %v3546_v36 = vpop.f32.mrf.mxu1 }
 0x2e0   :  { %v656_v39 = vadd.f32 %v3557_v37, %v3546_v36 }
 0x2e1   :  { %v569_v38 = vpop.f32.mrf.mxu1 }
 0x2e2   :  { %v651_v43 = vadd.f32 %v650_v40, %v569_v38 }
 0x2e7   :  { %v3568_v41 = vpop.f32.mrf.mxu1 }
 0x2e8   :  { %v745_v44 = vadd.f32 %v3568_v41, %v656_v39 }
 0x2e9   :  { %v735_v45 = vpop.f32.mrf.mxu1 }
 0x2ea   :  { %v754_v46 = vadd.f32 %v3353_v42, %v745_v44  ;;  %v744_v47 = vadd.f32 %v735_v45, %v651_v43 }
 0x2eb   :  { %v1021_v4 = vpop.f32.mrf.mxu1 }
 0x2ec   :  { %767 = vrot.lane.b32.xlu0 %v754_v46, %s4220_s28  ;;  %759 = vrot.lane.b32.xlu1 %v754_v46, %s4221_s29  ;;  %v753_v48 = vadd.f32 %v3353_v42, %v744_v47 }
 0x2ed   :  { %v3589_v5 = vpop.f32.mrf.mxu1 }
 0x2f0   :  { %757 = vrot.lane.b32.xlu1 %v753_v48, %s4221_s29 }
 0x2f4   :  { %765 = vrot.lane.b32.xlu1 %v753_v48, %s4220_s28 }
 0x35e   :  { %v760_v50 = vpop.permute.xlu1 %759  ;;  %v768_v52 = vpop.permute.xlu0 %767 }
 0x35f   :  { %v764_v51 = vmax.f32 %v754_v46, %v760_v50 }
 0x361   :  { %v772_v53 = vmax.f32 %v764_v51, %v768_v52 }
 0x362   :  { %v758_v54 = vpop.permute.xlu1 %757 }
 0x363   :  { %3776 = vtanh.f32 %v772_v53  ;;  %v763_v55 = vmax.f32 %v753_v48, %v758_v54 }
 0x366   :  { %v766_v56 = vpop.permute.xlu1 %765 }
 0x367   :  { %v771_v57 = vmax.f32 %v763_v55, %v766_v56 }
 0x369   :  { %3778 = vtanh.f32 %v771_v57 }
 0x370   :  { %v3777_v58 = vpop.eup %3776 }
 0x371   :  { %776 = vst.msk [vmem:[#allocation21 + $0x8] sm:$0xff] %vm324_vm2, %v3777_v58  ;;  %3569 = vmatprep.subr.mxu0 %v3777_v58 }
 0x372   :  { %3570 = vmatpush3.msra.mxu0 %v3777_v58 }
 0x376   :  { %v3779_v59 = vpop.eup %3778 }
 0x377   :  { %775 = vst.msk [vmem:[#allocation21] sm:$0xff] %vm324_vm2, %v3779_v59  ;;  %3571 = vmatprep.subr.mxu0 %v3779_v59 }
 0x378   :  { %3572 = vmatpush3.msra.mxu0 %v3779_v59 }
 0x379   :  { %3574 = vmatmul.mubr.msk.f32.vlgmr.msra.gmra.mxu0 %vm324_vm2, %v778_v60  ;;  %3576 = vmatprep.subr.mxu0 %v861_v61 }
 0x37a   :  { %3577 = vmatpush3.msra.mxu0 %v861_v61 }
 0x37b   :  { %3578 = vmatprep.subr.mxu0 %v860_v62 }
 0x37c   :  { %3579 = vmatpush3.msra.mxu0 %v860_v62 }
 0x37d   :  { %3590 = vmatprep.subr.mxu0 %v4222_v63 }
 0x439   :  { %v3575_v2 = vpop.f32.mrf.mxu0 }
 0x43b   :  { %v851_v3 = vpop.f32.mrf.mxu0 }
 0x43c   :  { %3580 = vmatprep.mubr.msk.f32.mxu0 %vm324_vm2, %v851_v3 }
 0x43d   :  { %3581 = vmatmul.mubr.msk.f32.vlgmr.msra.gmra.mxu0 %vm324_vm2, %v3575_v2 }
 0x43e   :  { %3594 = vmatprep.mubr.msk.f32.mxu0 %vm4223_vm4, %v4222_v63  ;;  %3591 = vmatpush3.msra.mxu0 %v4464_v22 }
 0x43f   :  { %3592 = vmatprep.subr.mxu0 %v4222_v63 }
 0x440   :  { %3593 = vmatpush3.msra.mxu0 %v4466_v23 }
 0x441   :  { %3595 = vmatmul.mubr.f32.vlgmr.msra.gmra.mxu0 %v4222_v63  ;;  %3604 = vmatprep.subr.mxu0 %v4222_v63 }
 0x442   :  { %3605 = vmatpush3.msra.mxu0 %v4433_v0  ;;  %3608 = vmatprep.mubr.msk.f32.mxu0 %vm4223_vm4, %v4222_v63 }
 0x443   :  { %3606 = vmatprep.subr.mxu0 %v4222_v63 }
 0x444   :  { %3607 = vmatpush3.msra.mxu0 %v4437_v1 }
 0x445   :  { %3618 = vmatprep.subr.mxu0 %v4222_v63 }
 0x4fd   :  { %v3582_v7 = vpop.f32.mrf.mxu0 }
 0x4fe   :  { %v4454_v8 = vadd.f32 %v3582_v7, %v3356_v6 }
 0x4ff   :  { %v941_v9 = vpop.f32.mrf.mxu0 }
 0x500   :  { %v4456_v10 = vadd.f32 %v3356_v6, %v941_v9 }
 0x501   :  { %v1120_v29 = vpop.f32.mrf.mxu0 }
 0x502   :  { %v1025_v11 = vadd.f32 %v1021_v4, %v4456_v10 }
 0x503   :  { %v3596_v30 = vpop.f32.mrf.mxu0 }
 0x504   :  { %3780 = vtanh.f32 %v1025_v11  ;;  %v3359_v13 = vmul.f32 -1.442695, %v1025_v11 }
 0x506   :  { %3782 = vpow2.f32 %v3359_v13 }
 0x511   :  { %v3781_v12 = vpop.eup %3780 }
 0x512   :  { %1035 = vrot.lane.b32.xlu0 %v3781_v12, %s4220_s28 }
 0x513   :  { %v3783_v14 = vpop.eup %3782 }
 0x514   :  { %v1029_v15 = vadd.f32 1.0, %v3783_v14 }
 0x516   :  { %3784 = vrcp.f32 %v1029_v15 }
 0x523   :  { %v3785_v16 = vpop.eup %3784 }
 0x524   :  { %v1033_v19 = vmul.f32 0.0, %v3785_v16 }
 0x584   :  { %v1036_v17 = vpop.permute.xlu0 %1035 }
 0x585   :  { %v1038_v18 = vmul.f32 %v3785_v16, %v1036_v17 }
 0x587   :  { %1040 = vrot.lane.b32.xlu1 %v1038_v18, %s4224_s13 }
 0x5f9   :  { %v1041_v20 = vpop.permute.xlu1 %1040 }
 0x5fa   :  { %v4461_v21 = vadd.f32 %v1041_v20, %v1033_v19 }
 0x5fc   :  { %3786 = vtanh.f32 %v4461_v21  ;;  %v1323_v55 = vrot.slane %v4461_v21, 6 }
 0x609   :  { %v3787_v26 = vpop.eup %3786 }
 0x60a   :  { %1046 = vrot.lane.b32.xlu0 %v3787_v26, %s4225_s6 }
 0x67c   :  { %v1047_v27 = vpop.permute.xlu0 %1046 }
 0x67d   :  { %v1049_v28 = vmul.f32 %v3785_v16, %v1047_v27 }
 0x67f   :  { %1125 = vrot.lane.b32.xlu1 %v1049_v28, %s4226_s9 }
 0x6f1   :  { %v1126_v31 = vpop.permute.xlu1 %1125 }
 0x6f2   :  { %3602 = vmatmul.mubr.msk.f32.vlgmr.msra.gmra.mxu1 %vm324_vm2, %v1126_v31  ;;  %3609 = vmatmul.mubr.msk.f32.vlgmr.msra.gmra.mxu0 %vm324_vm2, %v1126_v31 }
 0x6f3   :  { %3612 = vmatpush3.msra.mxu1 %v4464_v22  ;;  %3615 = vmatprep.mubr.msk.f32.mxu1 %vm4223_vm4, %v4222_v63 }
 0x6f4   :  { %3613 = vmatprep.subr.mxu1 %v4222_v63  ;;  %3619 = vmatpush3.msra.mxu0 %v4468_v24 }
 0x6f5   :  { %3614 = vmatpush3.msra.mxu1 %v4466_v23  ;;  %3620 = vmatprep.subr.mxu0 %v4222_v63 }
 0x6f6   :  { %3625 = vmatprep.subr.mxu1 %v4222_v63  ;;  %3621 = vmatpush3.msra.mxu0 %v4472_v25 }
 0x6f7   :  { %3622 = vmatprep.mubr.msk.f32.mxu0 %vm4223_vm4, %v4222_v63  ;;  %3632 = vmatprep.subr.mxu0 %v4222_v63 }
 0x7b2   :  { %v1195_v32 = vpop.f32.mrf.mxu1  ;;  %v1307_v34 = vpop.f32.mrf.mxu0 }
 0x7b3   :  { %v1196_v35 = vadd.f32 %v1195_v32, %v1120_v29  ;;  %v1312_v36 = vrot.slane %v1307_v34, 6 }
 0x7b4   :  { %v3603_v37 = vpop.f32.mrf.mxu1  ;;  %v3610_v38 = vpop.f32.mrf.mxu0 }
 0x7b5   :  { %v1206_v39 = vadd.f32 %v4506_v33, %v1196_v35  ;;  %v1314_v40 = vadd.f32 %v1312_v36, %v4456_v10 }
 0x7b7   :  { %3788 = vtanh.f32 %v1206_v39  ;;  %v3362_v43 = vmul.f32 -1.442695, %v1206_v39  ;;  %v3364_v44 = vmul.f32 -1.442695, %v1314_v40 }
 0x7b8   :  { %3790 = vtanh.f32 %v1314_v40 }
 0x7b9   :  { %3792 = vpow2.f32 %v3362_v43 }
 0x7ba   :  { %3794 = vpow2.f32 %v3364_v44 }
 0x7c4   :  { %v3789_v41 = vpop.eup %3788 }
 0x7c5   :  { %v3791_v42 = vpop.eup %3790  ;;  %1216 = vrot.lane.b32.xlu0 %v3789_v41, %s4220_s28 }
 0x7c6   :  { %1327 = vrot.lane.b32.xlu1 %v3791_v42, %s4220_s28  ;;  %v3793_v45 = vpop.eup %3792 }
 0x7c7   :  { %v3795_v46 = vpop.eup %3794  ;;  %v1210_v47 = vadd.f32 1.0, %v3793_v45 }
 0x7c8   :  { %v1318_v48 = vadd.f32 1.0, %v3795_v46 }
 0x7c9   :  { %3796 = vrcp.f32 %v1210_v47 }
 0x7ca   :  { %3798 = vrcp.f32 %v1318_v48 }
 0x7d6   :  { %v3797_v49 = vpop.eup %3796 }
 0x7d7   :  { %v3799_v51 = vpop.eup %3798  ;;  %v1214_v56 = vmul.f32 0.0, %v3797_v49 }
 0x7d8   :  { %v1325_v57 = vmul.f32 %v3799_v51, %v1323_v55 }
 0x837   :  { %v1217_v50 = vpop.permute.xlu0 %1216 }
 0x838   :  { %v1328_v52 = vpop.permute.xlu1 %1327  ;;  %v1219_v53 = vmul.f32 %v3797_v49, %v1217_v50 }
 0x839   :  { %v1330_v54 = vmul.f32 %v3799_v51, %v1328_v52 }
 0x83a   :  { %1221 = vrot.lane.b32.xlu0 %v1219_v53, %s4224_s13 }
 0x83b   :  { %1332 = vrot.lane.b32.xlu1 %v1330_v54, %s4224_s13 }
 0x8ac   :  { %v1222_v58 = vpop.permute.xlu0 %1221 }
 0x8ad   :  { %v1333_v59 = vpop.permute.xlu1 %1332  ;;  %v4515_v60 = vadd.f32 %v1222_v58, %v1214_v56 }
 0x8ae   :  { %v4517_v61 = vadd.f32 %v1333_v59, %v1325_v57 }
 0x8af   :  { %3800 = vtanh.f32 %v4515_v60 }
 0x8b0   :  { %3802 = vtanh.f32 %v4517_v61  ;;  %v1616_v41 = vrot.slane %v4517_v61, 6 }
 0x8bc   :  { %v3801_v62 = vpop.eup %3800 }
 0x8bd   :  { %v3803_v2 = vpop.eup %3802  ;;  %1227 = vrot.lane.b32.xlu0 %v3801_v62, %s4225_s6 }
 0x8be   :  { %1338 = vrot.lane.b32.xlu1 %v3803_v2, %s4225_s6 }
 0x92f   :  { %v1228_v3 = vpop.permute.xlu0 %1227 }
 0x930   :  { %v1339_v4 = vpop.permute.xlu1 %1338  ;;  %v1230_v5 = vmul.f32 %v3797_v49, %v1228_v3 }
 0x931   :  { %v1341_v6 = vmul.f32 %v3799_v51, %v1339_v4 }
 0x932   :  { %1232 = vrot.lane.b32.xlu0 %v1230_v5, %s4226_s9 }
 0x933   :  { %v1419_v7 = vrot.slane %v1341_v6, 2 }
 0x935   :  { %1420 = vrot.lane.b32.xlu1 %v1419_v7, %s4226_s9 }
 0x9a4   :  { %v1233_v9 = vpop.permute.xlu0 %1232 }
 0x9a5   :  { %1236 = vst.msk [vmem:[#allocation23] sm:$0x1] %vm1235_vm5, %v1233_v9  ;;  %3616 = vmatmul.mubr.msk.f32.vlgmr.msra.gmra.mxu1 %vm324_vm2, %v1233_v9 }
 0x9a6   :  { %1238 = vst.msk [vmem:[#allocation23 + $0x7] sm:$0x2] %vm1237_vm6, %v1233_v9  ;;  %3626 = vmatpush3.msra.mxu1 %v4433_v0  ;;  %3629 = vmatprep.mubr.msk.f32.mxu1 %vm4223_vm4, %v4222_v63 }
 0x9a7   :  { %v1421_v11 = vpop.permute.xlu1 %1420  ;;  %3627 = vmatprep.subr.mxu1 %v4222_v63 }
 0x9a8   :  { %3623 = vmatmul.mubr.msk.f32.vlgmr.msra.gmra.mxu0 %vm324_vm2, %v1421_v11  ;;  %3628 = vmatpush3.msra.mxu1 %v4437_v1 }
 0x9a9   :  { %3630 = vmatmul.mubr.msk.f32.vlgmr.msra.gmra.mxu1 %vm324_vm2, %v1421_v11  ;;  %3633 = vmatpush3.msra.mxu0 %v4464_v22 }
 0x9aa   :  { %3634 = vmatprep.subr.mxu0 %v4222_v63  ;;  %3636 = vmatprep.mubr.msk.f32.mxu0 %vm4223_vm4, %v4222_v63 }
 0x9ab   :  { %3635 = vmatpush3.msra.mxu0 %v4466_v23  ;;  %3639 = vmatprep.subr.mxu1 %v4222_v63 }
 0x9ac   :  { %3646 = vmatprep.subr.mxu0 %v4222_v63  ;;  %3640 = vmatpush3.msra.mxu1 %v4468_v24 }
 0x9ad   :  { %3641 = vmatprep.subr.mxu1 %v4222_v63  ;;  %3643 = vmatprep.mubr.msk.f32.mxu1 %vm4223_vm4, %v4222_v63 }
 0x9ae   :  { %3642 = vmatpush3.msra.mxu1 %v4472_v25 }
 0x9af   :  { %3653 = vmatprep.subr.mxu1 %v4222_v63 }
 0xa65   :  { %v1414_v12 = vpop.f32.mrf.mxu1 }
 0xa67   :  { %v3617_v13 = vpop.f32.mrf.mxu1 }
 0xa68   :  { %v1490_v14 = vpop.f32.mrf.mxu0 }
 0xa69   :  { %v1491_v15 = vadd.f32 %v1490_v14, %v1414_v12  ;;  %v1600_v16 = vpop.f32.mrf.mxu1 }
 0xa6a   :  { %v3624_v17 = vpop.f32.mrf.mxu0  ;;  %v1605_v18 = vrot.slane %v1600_v16, 4 }
 0xa6b   :  { %v1501_v19 = vadd.f32 %v4506_v33, %v1491_v15  ;;  %v3631_v20 = vpop.f32.mrf.mxu1 }
 0xa6c   :  { %v1607_v21 = vadd.f32 %v1605_v18, %v4456_v10 }
 0xa6d   :  { %3804 = vtanh.f32 %v1501_v19  ;;  %v3368_v28 = vmul.f32 -1.442695, %v1501_v19 }
 0xa6e   :  { %3806 = vtanh.f32 %v1607_v21  ;;  %v3370_v29 = vmul.f32 -1.442695, %v1607_v21 }
 0xa6f   :  { %3808 = vpow2.f32 %v3368_v28 }
 0xa70   :  { %3810 = vpow2.f32 %v3370_v29 }
 0xa7a   :  { %v3805_v26 = vpop.eup %3804 }
 0xa7b   :  { %v3807_v27 = vpop.eup %3806  ;;  %1511 = vrot.lane.b32.xlu0 %v3805_v26, %s4220_s28 }
 0xa7c   :  { %1620 = vrot.lane.b32.xlu1 %v3807_v27, %s4220_s28  ;;  %v3809_v30 = vpop.eup %3808 }
 0xa7d   :  { %v3811_v31 = vpop.eup %3810  ;;  %v1505_v32 = vadd.f32 1.0, %v3809_v30 }
 0xa7e   :  { %v1611_v34 = vadd.f32 1.0, %v3811_v31 }
 0xa7f   :  { %3812 = vrcp.f32 %v1505_v32 }
 0xa80   :  { %3814 = vrcp.f32 %v1611_v34 }
 0xa8c   :  { %v3813_v35 = vpop.eup %3812 }
 0xa8d   :  { %v3815_v37 = vpop.eup %3814  ;;  %v1509_v42 = vmul.f32 %v3813_v35, %v4515_v60 }
 0xa8e   :  { %v1618_v44 = vmul.f32 %v3815_v37, %v1616_v41 }
 0xaed   :  { %v1512_v36 = vpop.permute.xlu0 %1511 }
 0xaee   :  { %v1514_v38 = vmul.f32 %v3813_v35, %v1512_v36  ;;  %v1621_v39 = vpop.permute.xlu1 %1620 }
 0xaef   :  { %v1623_v40 = vmul.f32 %v3815_v37, %v1621_v39 }
 0xaf0   :  { %1516 = vrot.lane.b32.xlu0 %v1514_v38, %s4224_s13 }
 0xaf1   :  { %1625 = vrot.lane.b32.xlu1 %v1623_v40, %s4224_s13 }
 0xb62   :  { %v1517_v43 = vpop.permute.xlu0 %1516 }
 0xb63   :  { %v4556_v45 = vadd.f32 %v1517_v43, %v1509_v42  ;;  %v1626_v46 = vpop.permute.xlu1 %1625 }
 0xb64   :  { %v4558_v47 = vadd.f32 %v1626_v46, %v1618_v44 }
 0xb65   :  { %3816 = vtanh.f32 %v4556_v45 }
 0xb66   :  { %3818 = vtanh.f32 %v4558_v47  ;;  %v1909_v21 = vrot.slane %v4558_v47, 6 }
 0xb72   :  { %v3817_v48 = vpop.eup %3816 }
 0xb73   :  { %v3819_v49 = vpop.eup %3818  ;;  %1522 = vrot.lane.b32.xlu0 %v3817_v48, %s4225_s6 }
 0xb74   :  { %1631 = vrot.lane.b32.xlu1 %v3819_v49, %s4225_s6 }
 0xbe5   :  { %v1523_v50 = vpop.permute.xlu0 %1522 }
 0xbe6   :  { %v1525_v51 = vmul.f32 %v3813_v35, %v1523_v50  ;;  %v1632_v52 = vpop.permute.xlu1 %1631 }
 0xbe7   :  { %v1634_v53 = vmul.f32 %v3815_v37, %v1632_v52 }
 0xbe8   :  { %1527 = vrot.lane.b32.xlu0 %v1525_v51, %s4226_s9 }
 0xbe9   :  { %v1712_v54 = vrot.slane %v1634_v53, 4 }
 0xbeb   :  { %1713 = vrot.lane.b32.xlu1 %v1712_v54, %s4226_s9 }
 0xc5a   :  { %v1528_v55 = vpop.permute.xlu0 %1527 }
 0xc5b   :  { %1530 = vst.msk [vmem:[#allocation23 + $0x1] sm:$0x1] %vm1235_vm5, %v1528_v55  ;;  %3637 = vmatmul.mubr.msk.f32.vlgmr.msra.gmra.mxu0 %vm324_vm2, %v1528_v55 }
 0xc5c   :  { %1531 = vst.msk [vmem:[#allocation23 + $0x8] sm:$0x2] %vm1237_vm6, %v1528_v55  ;;  %3647 = vmatpush3.msra.mxu0 %v4433_v0  ;;  %3650 = vmatprep.mubr.msk.f32.mxu0 %vm4223_vm4, %v4222_v63 }
 0xc5d   :  { %3648 = vmatprep.subr.mxu0 %v4222_v63  ;;  %v1714_v56 = vpop.permute.xlu1 %1713 }
 0xc5e   :  { %3649 = vmatpush3.msra.mxu0 %v4437_v1  ;;  %3644 = vmatmul.mubr.msk.f32.vlgmr.msra.gmra.mxu1 %vm324_vm2, %v1714_v56 }
 0xc5f   :  { %3651 = vmatmul.mubr.msk.f32.vlgmr.msra.gmra.mxu0 %vm324_vm2, %v1714_v56  ;;  %3654 = vmatpush3.msra.mxu1 %v4464_v22 }
 0xc60   :  { %3655 = vmatprep.subr.mxu1 %v4222_v63  ;;  %3660 = vmatprep.subr.mxu0 %v4222_v63 }
 0xc61   :  { %3656 = vmatpush3.msra.mxu1 %v4466_v23  ;;  %3657 = vmatprep.mubr.msk.f32.mxu1 %vm4223_vm4, %v4222_v63 }
 0xc62   :  { %3661 = vmatpush3.msra.mxu0 %v4468_v24  ;;  %3667 = vmatprep.subr.mxu1 %v4222_v63 }
 0xc63   :  { %3662 = vmatprep.subr.mxu0 %v4222_v63  ;;  %3664 = vmatprep.mubr.msk.f32.mxu0 %vm4223_vm4, %v4222_v63 }
 0xc64   :  { %3663 = vmatpush3.msra.mxu0 %v4472_v25 }
 0xc65   :  { %3674 = vmatprep.subr.mxu0 %v4222_v63 }
 0xd1b   :  { %v1707_v57 = vpop.f32.mrf.mxu0 }
 0xd1d   :  { %v3638_v58 = vpop.f32.mrf.mxu0 }
 0xd1e   :  { %v1783_v59 = vpop.f32.mrf.mxu1 }
 0xd1f   :  { %v1784_v60 = vadd.f32 %v1783_v59, %v1707_v57  ;;  %v1893_v61 = vpop.f32.mrf.mxu0 }
 0xd20   :  { %v1898_v62 = vrot.slane %v1893_v61, 2  ;;  %v3645_v2 = vpop.f32.mrf.mxu1 }
 0xd21   :  { %v1794_v3 = vadd.f32 %v4506_v33, %v1784_v60  ;;  %v3652_v4 = vpop.f32.mrf.mxu0 }
 0xd22   :  { %v1900_v5 = vadd.f32 %v1898_v62, %v4456_v10 }
 0xd23   :  { %3820 = vtanh.f32 %v1794_v3  ;;  %v3374_v9 = vmul.f32 -1.442695, %v1794_v3 }
 0xd24   :  { %3822 = vtanh.f32 %v1900_v5  ;;  %v3376_v11 = vmul.f32 -1.442695, %v1900_v5 }
 0xd25   :  { %3824 = vpow2.f32 %v3374_v9 }
 0xd26   :  { %3826 = vpow2.f32 %v3376_v11 }
 0xd30   :  { %v3821_v6 = vpop.eup %3820 }
 0xd31   :  { %v3823_v7 = vpop.eup %3822  ;;  %1804 = vrot.lane.b32.xlu1 %v3821_v6, %s4220_s28 }
 0xd32   :  { %1913 = vrot.lane.b32.xlu0 %v3823_v7, %s4220_s28  ;;  %v3825_v12 = vpop.eup %3824 }
 0xd33   :  { %v3827_v13 = vpop.eup %3826  ;;  %v1798_v14 = vadd.f32 1.0, %v3825_v12 }
 0xd34   :  { %v1904_v15 = vadd.f32 1.0, %v3827_v13 }
 0xd35   :  { %3828 = vrcp.f32 %v1798_v14 }
 0xd36   :  { %3830 = vrcp.f32 %v1904_v15 }
 0xd42   :  { %v3829_v16 = vpop.eup %3828 }
 0xd43   :  { %v3831_v17 = vpop.eup %3830  ;;  %v1802_v26 = vmul.f32 %v3829_v16, %v4556_v45 }
 0xd44   :  { %v1911_v27 = vmul.f32 %v3831_v17, %v1909_v21 }
 0xda3   :  { %v1805_v10 = vpop.permute.xlu1 %1804 }
 0xda4   :  { %v1914_v18 = vpop.permute.xlu0 %1913  ;;  %v1807_v19 = vmul.f32 %v3829_v16, %v1805_v10 }
 0xda5   :  { %v1916_v20 = vmul.f32 %v3831_v17, %v1914_v18 }
 0xda6   :  { %1809 = vrot.lane.b32.xlu1 %v1807_v19, %s4224_s13 }
 0xda7   :  { %1918 = vrot.lane.b32.xlu0 %v1916_v20, %s4224_s13 }
 0xe18   :  { %v1810_v28 = vpop.permute.xlu1 %1809 }
 0xe19   :  { %v1919_v29 = vpop.permute.xlu0 %1918  ;;  %v4597_v30 = vadd.f32 %v1810_v28, %v1802_v26 }
 0xe1a   :  { %v4599_v31 = vadd.f32 %v1919_v29, %v1911_v27 }
 0xe1b   :  { %3832 = vtanh.f32 %v4597_v30 }
 0xe1c   :  { %3834 = vtanh.f32 %v4599_v31  ;;  %v2199_v4 = vrot.slane %v4599_v31, 6 }
 0xe28   :  { %v3833_v32 = vpop.eup %3832 }
 0xe29   :  { %v3835_v34 = vpop.eup %3834  ;;  %1815 = vrot.lane.b32.xlu1 %v3833_v32, %s4225_s6 }
 0xe2a   :  { %1924 = vrot.lane.b32.xlu0 %v3835_v34, %s4225_s6 }
 0xe9b   :  { %v1816_v35 = vpop.permute.xlu1 %1815 }
 0xe9c   :  { %v1925_v36 = vpop.permute.xlu0 %1924  ;;  %v1818_v37 = vmul.f32 %v3829_v16, %v1816_v35 }
 0xe9d   :  { %v1927_v38 = vmul.f32 %v3831_v17, %v1925_v36 }
 0xe9e   :  { %1820 = vrot.lane.b32.xlu0 %v1818_v37, %s4226_s9 }
 0xe9f   :  { %v2005_v39 = vrot.slane %v1927_v38, 6 }
 0xea1   :  { %2006 = vrot.lane.b32.xlu1 %v2005_v39, %s4226_s9 }
 0xf10   :  { %v1821_v40 = vpop.permute.xlu0 %1820 }
 0xf11   :  { %1823 = vst.msk [vmem:[#allocation23 + $0x2] sm:$0x1] %vm1235_vm5, %v1821_v40  ;;  %3658 = vmatmul.mubr.msk.f32.vlgmr.msra.gmra.mxu1 %vm324_vm2, %v1821_v40 }
 0xf12   :  { %1824 = vst.msk [vmem:[#allocation23 + $0x9] sm:$0x2] %vm1237_vm6, %v1821_v40  ;;  %3668 = vmatpush3.msra.mxu1 %v4433_v0  ;;  %3671 = vmatprep.mubr.msk.f32.mxu1 %vm4223_vm4, %v4222_v63 }
 0xf13   :  { %v2007_v41 = vpop.permute.xlu1 %2006  ;;  %3669 = vmatprep.subr.mxu1 %v4222_v63 }
 0xf14   :  { %3665 = vmatmul.mubr.msk.f32.vlgmr.msra.gmra.mxu0 %vm324_vm2, %v2007_v41  ;;  %3670 = vmatpush3.msra.mxu1 %v4437_v1 }
 0xf15   :  { %3672 = vmatmul.mubr.msk.f32.vlgmr.msra.gmra.mxu1 %vm324_vm2, %v2007_v41  ;;  %3681 = vmatprep.subr.mxu1 %v4222_v63 }
 0xf16   :  { %3675 = vmatpush3.msra.mxu0 %v4464_v22  ;;  %3682 = vmatpush3.msra.mxu1 %v4468_v24 }
 0xf17   :  { %3676 = vmatprep.subr.mxu0 %v4222_v63  ;;  %3683 = vmatprep.subr.mxu1 %v4222_v63 }
 0xf18   :  { %3677 = vmatpush3.msra.mxu0 %v4466_v23  ;;  %3678 = vmatprep.mubr.msk.f32.mxu0 %vm4223_vm4, %v4222_v63 }
 0xf19   :  { %3684 = vmatpush3.msra.mxu1 %v4472_v25  ;;  %3685 = vmatprep.mubr.msk.f32.mxu1 %vm4223_vm4, %v4222_v63 }
 0xf1a   :  { %3688 = vmatprep.subr.mxu0 %v4222_v63  ;;  %3695 = vmatprep.subr.mxu1 %v4222_v63 }
 0xfd1   :  { %v2000_v42 = vpop.f32.mrf.mxu1 }
 0xfd3   :  { %v3659_v43 = vpop.f32.mrf.mxu1 }
 0xfd4   :  { %v2076_v44 = vpop.f32.mrf.mxu0 }
 0xfd5   :  { %v2077_v45 = vadd.f32 %v2076_v44, %v2000_v42  ;;  %v2186_v46 = vpop.f32.mrf.mxu1 }
 0xfd6   :  { %v3666_v47 = vpop.f32.mrf.mxu0  ;;  %v2190_v48 = vadd.f32 %v2186_v46, %v4454_v8 }
 0xfd7   :  { %v2087_v49 = vadd.f32 %v4506_v33, %v2077_v45  ;;  %v3673_v50 = vpop.f32.mrf.mxu1 }
 0xfd8   :  { %3836 = vtanh.f32 %v2190_v48  ;;  %v3382_v53 = vmul.f32 -1.442695, %v2190_v48 }
 0xfd9   :  { %3838 = vtanh.f32 %v2087_v49  ;;  %v3380_v54 = vmul.f32 -1.442695, %v2087_v49 }
 0xfda   :  { %3840 = vpow2.f32 %v3382_v53 }
 0xfdb   :  { %3842 = vpow2.f32 %v3380_v54 }
 0xfe5   :  { %v3837_v51 = vpop.eup %3836 }
 0xfe6   :  { %v3839_v52 = vpop.eup %3838  ;;  %2203 = vrot.lane.b32.xlu1 %v3837_v51, %s4220_s28 }
 0xfe7   :  { %2097 = vrot.lane.b32.xlu0 %v3839_v52, %s4220_s28  ;;  %v3841_v55 = vpop.eup %3840 }
 0xfe8   :  { %v3843_v56 = vpop.eup %3842  ;;  %v2194_v57 = vadd.f32 1.0, %v3841_v55 }
 0xfe9   :  { %v2091_v58 = vadd.f32 1.0, %v3843_v56 }
 0xfea   :  { %3844 = vrcp.f32 %v2194_v57 }
 0xfeb   :  { %3846 = vrcp.f32 %v2091_v58 }
 0xff7   :  { %v3845_v59 = vpop.eup %3844 }
 0xff8   :  { %v3847_v61 = vpop.eup %3846  ;;  %v2201_v5 = vmul.f32 %v3845_v59, %v2199_v4 }
 0xff9   :  { %v2095_v6 = vmul.f32 %v3847_v61, %v4597_v30 }
0x1058   :  { %v2204_v60 = vpop.permute.xlu1 %2203 }
0x1059   :  { %v2098_v62 = vpop.permute.xlu0 %2097  ;;  %v2206_v2 = vmul.f32 %v3845_v59, %v2204_v60 }
0x105a   :  { %v2100_v3 = vmul.f32 %v3847_v61, %v2098_v62 }
0x105b   :  { %2208 = vrot.lane.b32.xlu1 %v2206_v2, %s4224_s13 }
0x105c   :  { %2102 = vrot.lane.b32.xlu0 %v2100_v3, %s4224_s13 }
0x10cd   :  { %v2209_v7 = vpop.permute.xlu1 %2208 }
0x10ce   :  { %v2103_v9 = vpop.permute.xlu0 %2102  ;;  %v4638_v11 = vadd.f32 %v2209_v7, %v2201_v5 }
0x10cf   :  { %v4640_v12 = vadd.f32 %v2103_v9, %v2095_v6 }
0x10d0   :  { %3848 = vtanh.f32 %v4638_v11  ;;  %v2491_v51 = vrot.slane %v4638_v11, 6 }
0x10d1   :  { %3850 = vtanh.f32 %v4640_v12 }
0x10dd   :  { %v3849_v13 = vpop.eup %3848 }
0x10de   :  { %v3851_v14 = vpop.eup %3850  ;;  %2214 = vrot.lane.b32.xlu1 %v3849_v13, %s4225_s6 }
0x10df   :  { %2108 = vrot.lane.b32.xlu0 %v3851_v14, %s4225_s6 }
0x1150   :  { %v2215_v15 = vpop.permute.xlu1 %2214 }
0x1151   :  { %v2109_v16 = vpop.permute.xlu0 %2108  ;;  %v2217_v10 = vmul.f32 %v3845_v59, %v2215_v15 }
0x1152   :  { %v2111_v17 = vmul.f32 %v3847_v61, %v2109_v16 }
0x1153   :  { %2295 = vrot.lane.b32.xlu1 %v2217_v10, %s4226_s9 }
0x1154   :  { %2113 = vrot.lane.b32.xlu0 %v2111_v17, %s4226_s9 }
0x11c5   :  { %v2296_v18 = vpop.permute.xlu1 %2295 }
0x11c6   :  { %v2114_v19 = vpop.permute.xlu0 %2113  ;;  %3686 = vmatmul.mubr.msk.f32.vlgmr.msra.gmra.mxu1 %vm324_vm2, %v2296_v18 }
0x11c7   :  { %2116 = vst.msk [vmem:[#allocation23 + $0x3] sm:$0x1] %vm1235_vm5, %v2114_v19  ;;  %3679 = vmatmul.mubr.msk.f32.vlgmr.msra.gmra.mxu0 %vm324_vm2, %v2114_v19  ;;  %3696 = vmatpush3.msra.mxu1 %v4464_v22 }
0x11c8   :  { %2117 = vst.msk [vmem:[#allocation23 + $0xa] sm:$0x2] %vm1237_vm6, %v2114_v19  ;;  %3689 = vmatpush3.msra.mxu0 %v4433_v0  ;;  %3692 = vmatprep.mubr.msk.f32.mxu0 %vm4223_vm4, %v4222_v63 }
0x11c9   :  { %3690 = vmatprep.subr.mxu0 %v4222_v63  ;;  %3697 = vmatprep.subr.mxu1 %v4222_v63 }
0x11ca   :  { %3691 = vmatpush3.msra.mxu0 %v4437_v1  ;;  %3698 = vmatpush3.msra.mxu1 %v4466_v23 }
0x11cb   :  { %3693 = vmatmul.mubr.msk.f32.vlgmr.msra.gmra.mxu0 %vm324_vm2, %v2296_v18  ;;  %3699 = vmatprep.mubr.msk.f32.mxu1 %vm4223_vm4, %v4222_v63 }
0x11cc   :  { %3702 = vmatprep.subr.mxu0 %v4222_v63  ;;  %3709 = vmatprep.subr.mxu1 %v4222_v63 }
0x11cd   :  { %3703 = vmatpush3.msra.mxu0 %v4468_v24  ;;  %3706 = vmatprep.mubr.msk.f32.mxu0 %vm4223_vm4, %v4222_v63 }
0x11ce   :  { %3704 = vmatprep.subr.mxu0 %v4222_v63 }
0x11cf   :  { %3705 = vmatpush3.msra.mxu0 %v4472_v25 }
0x11d0   :  { %3716 = vmatprep.subr.mxu0 %v4222_v63 }
0x1286   :  { %v2365_v20 = vpop.f32.mrf.mxu1 }
0x1287   :  { %v2290_v21 = vpop.f32.mrf.mxu0 }
0x1288   :  { %v2366_v26 = vadd.f32 %v2365_v20, %v2290_v21  ;;  %v3687_v27 = vpop.f32.mrf.mxu1 }
0x1289   :  { %v3680_v28 = vpop.f32.mrf.mxu0 }
0x128a   :  { %v2376_v29 = vadd.f32 %v4506_v33, %v2366_v26 }
0x128b   :  { %v2475_v30 = vpop.f32.mrf.mxu0 }
0x128c   :  { %3852 = vtanh.f32 %v2376_v29  ;;  %v2480_v31 = vrot.slane %v2475_v30, 6  ;;  %v3386_v37 = vmul.f32 -1.442695, %v2376_v29 }
0x128d   :  { %v3694_v32 = vpop.f32.mrf.mxu0 }
0x128e   :  { %v2482_v34 = vadd.f32 %v2480_v31, %v4454_v8 }
0x1290   :  { %3854 = vtanh.f32 %v2482_v34  ;;  %v3388_v38 = vmul.f32 -1.442695, %v2482_v34 }
0x1291   :  { %3856 = vpow2.f32 %v3386_v37 }
0x1292   :  { %3858 = vpow2.f32 %v3388_v38 }
0x1299   :  { %v3853_v35 = vpop.eup %3852 }
0x129a   :  { %2386 = vrot.lane.b32.xlu0 %v3853_v35, %s4220_s28 }
0x129d   :  { %v3855_v36 = vpop.eup %3854 }
0x129e   :  { %2495 = vrot.lane.b32.xlu1 %v3855_v36, %s4220_s28  ;;  %v3857_v39 = vpop.eup %3856 }
0x129f   :  { %v2380_v40 = vadd.f32 1.0, %v3857_v39  ;;  %v3859_v41 = vpop.eup %3858 }
0x12a0   :  { %v2486_v42 = vadd.f32 1.0, %v3859_v41 }
0x12a1   :  { %3860 = vrcp.f32 %v2380_v40 }
0x12a2   :  { %3862 = vrcp.f32 %v2486_v42 }
0x12ae   :  { %v3861_v43 = vpop.eup %3860 }
0x12af   :  { %v3863_v46 = vpop.eup %3862  ;;  %v2384_v49 = vmul.f32 %v3861_v43, %v4640_v12 }
0x12b0   :  { %v2493_v53 = vmul.f32 %v3863_v46, %v2491_v51 }
0x130c   :  { %v2387_v44 = vpop.permute.xlu0 %2386 }
0x130d   :  { %v2389_v45 = vmul.f32 %v3861_v43, %v2387_v44 }
0x130f   :  { %2391 = vrot.lane.b32.xlu0 %v2389_v45, %s4224_s13  ;;  %v3909_v45 = vld [vmem:[#allocation16] sm:$0xff] }
0x1310   :  { %v2496_v47 = vpop.permute.xlu1 %2495 }
0x1311   :  { %v2498_v48 = vmul.f32 %v3863_v46, %v2496_v47 }
0x1313   :  { %2500 = vrot.lane.b32.xlu1 %v2498_v48, %s4224_s13 }
0x1381   :  { %v2392_v50 = vpop.permute.xlu0 %2391 }
0x1382   :  { %v4679_v52 = vadd.f32 %v2392_v50, %v2384_v49 }
0x1384   :  { %3864 = vtanh.f32 %v4679_v52 }
0x1385   :  { %v2501_v54 = vpop.permute.xlu1 %2500 }
0x1386   :  { %v4682_v55 = vadd.f32 %v2501_v54, %v2493_v53 }
0x1388   :  { %3866 = vtanh.f32 %v4682_v55  ;;  %v2784_v27 = vrot.slane %v4682_v55, 6 }
0x1391   :  { %v3865_v56 = vpop.eup %3864 }
0x1392   :  { %2397 = vrot.lane.b32.xlu0 %v3865_v56, %s4225_s6 }
0x1395   :  { %v3867_v57 = vpop.eup %3866 }
0x1396   :  { %2506 = vrot.lane.b32.xlu1 %v3867_v57, %s4225_s6 }
0x1404   :  { %v2398_v58 = vpop.permute.xlu0 %2397 }
0x1405   :  { %v2400_v59 = vmul.f32 %v3861_v43, %v2398_v58  ;;  %v3908_v43 = vld [vmem:[#allocation16 + $0x8] sm:$0xff] }
0x1407   :  { %2402 = vrot.lane.b32.xlu0 %v2400_v59, %s4226_s9 }
0x1408   :  { %v2507_v60 = vpop.permute.xlu1 %2506 }
0x1409   :  { %v2509_v61 = vmul.f32 %v3863_v46, %v2507_v60 }
0x140b   :  { %v2587_v62 = vrot.slane %v2509_v61, 2 }
0x140d   :  { %2588 = vrot.lane.b32.xlu1 %v2587_v62, %s4226_s9 }
0x1479   :  { %v2403_v2 = vpop.permute.xlu0 %2402 }
0x147a   :  { %2405 = vst.msk [vmem:[#allocation23 + $0x4] sm:$0x1] %vm1235_vm5, %v2403_v2  ;;  %3700 = vmatmul.mubr.msk.f32.vlgmr.msra.gmra.mxu1 %vm324_vm2, %v2403_v2 }
0x147b   :  { %2406 = vst.msk [vmem:[#allocation23 + $0xb] sm:$0x2] %vm1237_vm6, %v2403_v2  ;;  %3710 = vmatpush3.msra.mxu1 %v4433_v0  ;;  %3713 = vmatprep.mubr.msk.f32.mxu1 %vm4223_vm4, %v4222_v63 }
0x147c   :  { %3711 = vmatprep.subr.mxu1 %v4222_v63 }
0x147d   :  { %3712 = vmatpush3.msra.mxu1 %v4437_v1 }
0x147e   :  { %3723 = vmatprep.subr.mxu1 %v4222_v63 }
0x147f   :  { %v2589_v3 = vpop.permute.xlu1 %2588 }
0x1480   :  { %3707 = vmatmul.mubr.msk.f32.vlgmr.msra.gmra.mxu0 %vm324_vm2, %v2589_v3  ;;  %3714 = vmatmul.mubr.msk.f32.vlgmr.msra.gmra.mxu1 %vm324_vm2, %v2589_v3 }
0x1481   :  { %3717 = vmatpush3.msra.mxu0 %v4464_v22  ;;  %3720 = vmatprep.mubr.msk.f32.mxu0 %vm4223_vm4, %v4222_v63 }
0x1482   :  { %3718 = vmatprep.subr.mxu0 %v4222_v63  ;;  %3724 = vmatpush3.msra.mxu1 %v4468_v24 }
0x1483   :  { %3719 = vmatpush3.msra.mxu0 %v4466_v23  ;;  %3725 = vmatprep.subr.mxu1 %v4222_v63 }
0x1484   :  { %3730 = vmatprep.subr.mxu0 %v4222_v63  ;;  %3726 = vmatpush3.msra.mxu1 %v4472_v25 }
0x1485   :  { %3727 = vmatprep.mubr.msk.f32.mxu1 %vm4223_vm4, %v4222_v63  ;;  %3737 = vmatprep.subr.mxu1 %v4222_v63 }
0x153a   :  { %v2582_v0 = vpop.f32.mrf.mxu1 }
0x153c   :  { %v3701_v1 = vpop.f32.mrf.mxu1 }
0x1540   :  { %v2658_v22 = vpop.f32.mrf.mxu0  ;;  %v2768_v4 = vpop.f32.mrf.mxu1 }
0x1541   :  { %v2659_v5 = vadd.f32 %v2658_v22, %v2582_v0  ;;  %v2773_v6 = vrot.slane %v2768_v4, 4 }
0x1542   :  { %v3708_v24 = vpop.f32.mrf.mxu0  ;;  %v3715_v7 = vpop.f32.mrf.mxu1 }
0x1543   :  { %v2669_v23 = vadd.f32 %v4506_v33, %v2659_v5  ;;  %v2775_v9 = vadd.f32 %v2773_v6, %v4454_v8 }
0x1545   :  { %3868 = vtanh.f32 %v2669_v23  ;;  %v3392_v12 = vmul.f32 -1.442695, %v2669_v23  ;;  %v3394_v13 = vmul.f32 -1.442695, %v2775_v9 }
0x1546   :  { %3870 = vtanh.f32 %v2775_v9 }
0x1547   :  { %3872 = vpow2.f32 %v3392_v12 }
0x1548   :  { %3874 = vpow2.f32 %v3394_v13 }
0x1552   :  { %v3869_v25 = vpop.eup %3868 }
0x1553   :  { %v3871_v11 = vpop.eup %3870  ;;  %2679 = vrot.lane.b32.xlu0 %v3869_v25, %s4220_s28  ;;  %v3099_v25 = vld [vmem:[#allocation19 + $0x8] sm:$0xff] }
0x1554   :  { %2788 = vrot.lane.b32.xlu1 %v3871_v11, %s4220_s28  ;;  %v3873_v14 = vpop.eup %3872  ;;  %v3098_v11 = vld [vmem:[#allocation19] sm:$0xff] }
0x1555   :  { %v3875_v15 = vpop.eup %3874  ;;  %v2673_v16 = vadd.f32 1.0, %v3873_v14  ;;  %v3097_v14 = vld [vmem:[#allocation17 + $0x8] sm:$0xff] }
0x1556   :  { %v2779_v10 = vadd.f32 1.0, %v3875_v15  ;;  %v3096_v15 = vld [vmem:[#allocation17] sm:$0xff] }
0x1557   :  { %3876 = vrcp.f32 %v2673_v16 }
0x1558   :  { %3878 = vrcp.f32 %v2779_v10 }
0x1564   :  { %v3877_v17 = vpop.eup %3876 }
0x1565   :  { %v3879_v19 = vpop.eup %3878  ;;  %v2677_v28 = vmul.f32 %v3877_v17, %v4679_v52 }
0x1566   :  { %v2786_v30 = vmul.f32 %v3879_v19, %v2784_v27 }
0x15c5   :  { %v2680_v18 = vpop.permute.xlu0 %2679 }
0x15c6   :  { %v2682_v20 = vmul.f32 %v3877_v17, %v2680_v18  ;;  %v2789_v21 = vpop.permute.xlu1 %2788 }
0x15c7   :  { %v2791_v26 = vmul.f32 %v3879_v19, %v2789_v21 }
0x15c8   :  { %2684 = vrot.lane.b32.xlu0 %v2682_v20, %s4224_s13 }
0x15c9   :  { %2793 = vrot.lane.b32.xlu1 %v2791_v26, %s4224_s13 }
0x163a   :  { %v2685_v29 = vpop.permute.xlu0 %2684 }
0x163b   :  { %v4720_v31 = vadd.f32 %v2685_v29, %v2677_v28  ;;  %v2794_v32 = vpop.permute.xlu1 %2793  ;;  %v3403_v28 = vld [vmem:[%s4804_s16] ss:$0 sm:$0xff]  ;;  %s4227_s16 = smov [#allocation21]  }
0x163c   :  { %v4722_v34 = vadd.f32 %v2794_v32, %v2786_v30  ;;  %s3303_s1 = sshll.u32 %s4227_s16, 4  ;;  %s3304_s1 = int_to_ptr.vmem [resolvable:$true] %s3303_s1 }
0x163d   :  { %3880 = vtanh.f32 %v4720_v31  ;;  %s4130_s25 = scalar_lea.vmem %s3304_s1, 256  ;;  %p4135_p0 = scmp.lt.s32.totalorder %s3304_s1, %s3304_s1 }
0x163e   :  { %3882 = vtanh.f32 %v4722_v34  ;;  %v3077_v4 = vrot.slane %v4722_v34, 6  ;;  %p4131_p13 = scmp.ne.s32.totalorder %s3304_s1, %s4130_s25  ;;  %p4136_p1 = scmp.lt.s32.totalorder %s4130_s25, %s4130_s25 }
0x1640   :  { %p4137_p2 = por %p4136_p1, %p4135_p0 }
0x1642   :  { %p4138_p3 = pnand %p4137_p2, %p4131_p13 }
0x164a   :  { %v3881_v35 = vpop.eup %3880 }
0x164b   :  { %v3883_v36 = vpop.eup %3882  ;;  %2690 = vrot.lane.b32.xlu0 %v3881_v35, %s4225_s6 }
0x164c   :  { %2799 = vrot.lane.b32.xlu1 %v3883_v36, %s4225_s6 }
0x16bd   :  { %v2691_v37 = vpop.permute.xlu0 %2690 }
0x16be   :  { %v2693_v38 = vmul.f32 %v3877_v17, %v2691_v37  ;;  %v2800_v39 = vpop.permute.xlu1 %2799 }
0x16bf   :  { %v2802_v40 = vmul.f32 %v3879_v19, %v2800_v39 }
0x16c0   :  { %2695 = vrot.lane.b32.xlu0 %v2693_v38, %s4226_s9 }
0x16c1   :  { %v2880_v41 = vrot.slane %v2802_v40, 4 }
0x16c3   :  { %2881 = vrot.lane.b32.xlu1 %v2880_v41, %s4226_s9 }
0x1732   :  { %v2696_v42 = vpop.permute.xlu0 %2695 }
0x1733   :  { %2698 = vst.msk [vmem:[#allocation23 + $0x5] sm:$0x1] %vm1235_vm5, %v2696_v42  ;;  %3721 = vmatmul.mubr.msk.f32.vlgmr.msra.gmra.mxu0 %vm324_vm2, %v2696_v42 }
0x1734   :  { %2699 = vst.msk [vmem:[#allocation23 + $0xc] sm:$0x2] %vm1237_vm6, %v2696_v42  ;;  %3731 = vmatpush3.msra.mxu0 %v3908_v43  ;;  %3734 = vmatprep.mubr.msk.f32.mxu0 %vm4223_vm4, %v4222_v63 }
0x1735   :  { %v2882_v44 = vpop.permute.xlu1 %2881  ;;  %3732 = vmatprep.subr.mxu0 %v4222_v63 }
0x1736   :  { %3728 = vmatmul.mubr.msk.f32.vlgmr.msra.gmra.mxu1 %vm324_vm2, %v2882_v44  ;;  %3733 = vmatpush3.msra.mxu0 %v3909_v45 }
0x1737   :  { %3735 = vmatmul.mubr.msk.f32.vlgmr.msra.gmra.mxu0 %vm324_vm2, %v2882_v44  ;;  %3741 = vmatprep.mubr.msk.f32.mxu1 %vm4223_vm4, %v4222_v63 }
0x1738   :  { %3744 = vmatprep.subr.mxu0 %v4222_v63  ;;  %3748 = vmatprep.mubr.msk.f32.mxu0 %vm4223_vm4, %v4222_v63 }
0x1739   :  { %3738 = vmatpush3.msra.mxu1 %v3099_v25  ;;  %3745 = vmatpush3.msra.mxu0 %v3097_v14 }
0x173a   :  { %3739 = vmatprep.subr.mxu1 %v4222_v63  ;;  %3746 = vmatprep.subr.mxu0 %v4222_v63 }
0x173b   :  { %3740 = vmatpush3.msra.mxu1 %v3098_v11  ;;  %3747 = vmatpush3.msra.mxu0 %v3096_v15 }
0x17f3   :  { %v2875_v46 = vpop.f32.mrf.mxu0 }
0x17f5   :  { %v3722_v47 = vpop.f32.mrf.mxu0 }
0x17f6   :  { %v2951_v48 = vpop.f32.mrf.mxu1 }
0x17f7   :  { %v2952_v49 = vadd.f32 %v2951_v48, %v2875_v46  ;;  %v3061_v50 = vpop.f32.mrf.mxu0 }
0x17f8   :  { %v3729_v51 = vpop.f32.mrf.mxu1  ;;  %v3066_v52 = vrot.slane %v3061_v50, 2 }
0x17f9   :  { %v2962_v53 = vadd.f32 %v4506_v33, %v2952_v49  ;;  %v3736_v54 = vpop.f32.mrf.mxu0 }
0x17fa   :  { %v3068_v55 = vadd.f32 %v3066_v52, %v4454_v8 }
0x17fb   :  { %3884 = vtanh.f32 %v2962_v53  ;;  %v3398_v58 = vmul.f32 -1.442695, %v2962_v53 }
0x17fc   :  { %3886 = vtanh.f32 %v3068_v55  ;;  %v3400_v59 = vmul.f32 -1.442695, %v3068_v55 }
0x17fd   :  { %3888 = vpow2.f32 %v3398_v58 }
0x17fe   :  { %3890 = vpow2.f32 %v3400_v59 }
0x1808   :  { %v3885_v56 = vpop.eup %3884 }
0x1809   :  { %v3887_v57 = vpop.eup %3886  ;;  %2972 = vrot.lane.b32.xlu1 %v3885_v56, %s4220_s28 }
0x180a   :  { %3081 = vrot.lane.b32.xlu0 %v3887_v57, %s4220_s28  ;;  %v3889_v60 = vpop.eup %3888 }
0x180b   :  { %v3891_v61 = vpop.eup %3890  ;;  %v2966_v62 = vadd.f32 1.0, %v3889_v60 }
0x180c   :  { %v3072_v2 = vadd.f32 1.0, %v3891_v61 }
0x180d   :  { %3892 = vrcp.f32 %v2966_v62 }
0x180e   :  { %3894 = vrcp.f32 %v3072_v2 }
0x181a   :  { %v3893_v33 = vpop.eup %3892 }
0x181b   :  { %v3895_v3 = vpop.eup %3894  ;;  %v2970_v5 = vmul.f32 %v3893_v33, %v4720_v31 }
0x181c   :  { %v3079_v24 = vmul.f32 %v3895_v3, %v3077_v4 }
0x187b   :  { %v2973_v8 = vpop.permute.xlu1 %2972 }
0x187c   :  { %v2975_v0 = vmul.f32 %v3893_v33, %v2973_v8  ;;  %v3082_v1 = vpop.permute.xlu0 %3081 }
0x187d   :  { %v3084_v22 = vmul.f32 %v3895_v3, %v3082_v1 }
0x187e   :  { %2977 = vrot.lane.b32.xlu1 %v2975_v0, %s4224_s13 }
0x187f   :  { %3086 = vrot.lane.b32.xlu0 %v3084_v22, %s4224_s13 }
0x18f0   :  { %v2978_v6 = vpop.permute.xlu1 %2977 }
0x18f1   :  { %v2980_v7 = vadd.f32 %v2978_v6, %v2970_v5  ;;  %v3087_v23 = vpop.permute.xlu0 %3086 }
0x18f2   :  { %v3089_v9 = vadd.f32 %v3087_v23, %v3079_v24 }
0x18f3   :  { %3896 = vtanh.f32 %v2980_v7 }
0x18f4   :  { %3898 = vtanh.f32 %v3089_v9 }
0x1900   :  { %v3897_v12 = vpop.eup %3896 }
0x1901   :  { %v3899_v13 = vpop.eup %3898  ;;  %2983 = vrot.lane.b32.xlu1 %v3897_v12, %s4225_s6 }
0x1902   :  { %3092 = vrot.lane.b32.xlu0 %v3899_v13, %s4225_s6 }
0x1973   :  { %v2984_v16 = vpop.permute.xlu1 %2983 }
0x1974   :  { %v2986_v10 = vmul.f32 %v3893_v33, %v2984_v16  ;;  %v3093_v17 = vpop.permute.xlu0 %3092 }
0x1975   :  { %v3095_v18 = vmul.f32 %v3895_v3, %v3093_v17 }
0x1976   :  { %2988 = vrot.lane.b32.xlu0 %v2986_v10, %s4226_s9 }
0x1977   :  { %v3173_v19 = vrot.slane %v3095_v18, 6 }
0x1979   :  { %3174 = vrot.lane.b32.xlu1 %v3173_v19, %s4226_s9 }
0x19e8   :  { %v2989_v20 = vpop.permute.xlu0 %2988 }
0x19e9   :  { %2991 = vst.msk [vmem:[#allocation23 + $0x6] sm:$0x1] %vm1235_vm5, %v2989_v20  ;;  %3742 = vmatmul.mubr.msk.f32.vlgmr.msra.gmra.mxu1 %vm324_vm2, %v2989_v20 }
0x19ea   :  { %2992 = vst.msk [vmem:[#allocation23 + $0xd] sm:$0x2] %vm1237_vm6, %v2989_v20 }
0x19eb   :  { %v3175_v21 = vpop.permute.xlu1 %3174 }
0x19ec   :  { %3749 = vmatmul.mubr.msk.f32.vlgmr.msra.gmra.mxu0 %vm324_vm2, %v3175_v21 }
0x1aa9   :  { %v3168_v63 = vpop.f32.mrf.mxu1 }
0x1aab   :  { %v3743_v26 = vpop.f32.mrf.mxu1 }
0x1aac   :  { %v3244_v27 = vpop.f32.mrf.mxu0 }
0x1aad   :  { %v3245_v29 = vadd.f32 %v3244_v27, %v3168_v63 }
0x1aae   :  { %v3750_v30 = vpop.f32.mrf.mxu0 }
0x1aaf   :  { %v3255_v31 = vadd.f32 %v3403_v28, %v3245_v29 }
0x1ab1   :  { %3900 = vtanh.f32 %v3255_v31  ;;  %v3404_v34 = vmul.f32 -1.442695, %v3255_v31 }
0x1ab3   :  { %3902 = vpow2.f32 %v3404_v34 }
0x1abe   :  { %v3901_v32 = vpop.eup %3900 }
0x1abf   :  { %3265 = vrot.lane.b32.xlu0 %v3901_v32, %s4220_s28 }
0x1ac0   :  { %v3903_v35 = vpop.eup %3902 }
0x1ac1   :  { %v3259_v36 = vadd.f32 1.0, %v3903_v35 }
0x1ac3   :  { %3904 = vrcp.f32 %v3259_v36 }
0x1ad0   :  { %v3905_v37 = vpop.eup %3904 }
0x1ad1   :  { %v3263_v40 = vmul.f32 %v3905_v37, %v2980_v7 }
0x1b31   :  { %v3266_v38 = vpop.permute.xlu0 %3265 }
0x1b32   :  { %v3268_v39 = vmul.f32 %v3905_v37, %v3266_v38 }
0x1b34   :  { %3270 = vrot.lane.b32.xlu1 %v3268_v39, %s4224_s13 }
0x1ba6   :  { %v3271_v41 = vpop.permute.xlu1 %3270 }
0x1ba7   :  { %v3273_v42 = vadd.f32 %v3271_v41, %v3263_v40 }
0x1ba9   :  { %3906 = vtanh.f32 %v3273_v42 }
0x1bb6   :  { %v3907_v43 = vpop.eup %3906 }
0x1bb7   :  { %3276 = vrot.lane.b32.xlu0 %v3907_v43, %s4225_s6 }
0x1bb8   :  { %4141 = shalt.err (!%p4138_p3)
}
0x1bb9   :  { %3309 = dma.vmem_to_hbm [thread:$0]  %s3304_s1, 256, %s4806_s18, [#allocation22], %s4208_s22, %s4208_s22, %s4209_s2  }
0x1bba   :  { %s4150_s26 = scalar_lea.vmem %s3292_s24, 256  ;;  %p4155_p5 = scmp.lt.s32.totalorder %s3292_s24, %s3292_s24 }
0x1bbb   :  { %p4151_p4 = scmp.ne.s32.totalorder %s3292_s24, %s4150_s26  ;;  %p4156_p6 = scmp.lt.s32.totalorder %s4150_s26, %s4150_s26 }
0x1bbd   :  { %p4157_p7 = por %p4156_p6, %p4155_p5 }
0x1bbf   :  { %p4158_p8 = pnand %p4157_p7, %p4151_p4 }
0x1bc1   :  { %4161 = shalt.err (!%p4158_p8)
}
0x1bc2   :  { %3297 = dma.vmem_to_hbm [thread:$0]  %s3292_s24, 256, %s4805_s17, [#allocation4], %s4208_s22, %s4208_s22, %s4209_s2  }
0x1bc3   :  { %s4229_s18 = smov [#allocation23]  }
0x1bc4   :  { %s3315_s11 = sshll.u32 %s4229_s18, 4  ;;  %s3316_s11 = int_to_ptr.vmem [resolvable:$true] %s3315_s11 }
0x1bc5   :  { %s4170_s28 = scalar_lea.vmem %s3316_s11, 256  ;;  %p4175_p10 = scmp.lt.s32.totalorder %s3316_s11, %s3316_s11 }
0x1bc6   :  { %p4171_p9 = scmp.ne.s32.totalorder %s3316_s11, %s4170_s28  ;;  %p4176_p11 = scmp.lt.s32.totalorder %s4170_s28, %s4170_s28 }
0x1bc8   :  { %p4177_p12 = por %p4176_p11, %p4175_p10 }
0x1bca   :  { %p4178_p13 = pnand %p4177_p12, %p4171_p9 }
0x1c29   :  { %v3277_v44 = vpop.permute.xlu0 %3276 }
0x1c2a   :  { %v3279_v45 = vmul.f32 %v3905_v37, %v3277_v44 }
0x1c2c   :  { %3281 = vrot.lane.b32.xlu1 %v3279_v45, %s4226_s9 }
0x1c9e   :  { %v3282_v46 = vpop.permute.xlu1 %3281 }
0x1c9f   :  { %3284 = vst.msk [vmem:[#allocation23 + $0x7] sm:$0x1] %vm1235_vm5, %v3282_v46 }
0x1ca0   :  { %3285 = vst.msk [vmem:[#allocation23 + $0xe] sm:$0x2] %vm1237_vm6, %v3282_v46 }
0x1ca1   :  { %4181 = shalt.err (!%p4178_p13)
}
0x1ca2   :  { %3321 = dma.vmem_to_hbm [thread:$0]  %s3316_s11, 256, %s4807_s19, [#allocation22], %s4208_s22, %s4208_s22, %s4209_s2  }
0x1ca3   :  { %4202 = dma.done.wait [#allocation4], 256  }
0x1ca4   :  { %4203 = vsyncadd [#allocation4], 4294967040 }
0x1ca5   :  { %4204 = dma.done.wait [#allocation22], 512  }
0x1ca6   :  { %4205 = vsyncadd [#allocation22], 4294966784 }
0x1ca7   :  { %3331 = vsyncpa [#allocation3], 1 }
0x1ca8   :  { %3332 = vsyncpa [#allocation6], 1 }
0x1ca9   :  { %3333 = vsyncpa [#allocation9], 1 }
0x1caa   :  { %3334 = vsyncpa [#allocation12], 1 }
0x1cab   :  { %3335 = vsyncpa [#allocation15], 1 }
0x1cac   :  { %3336 = vsyncpa [#allocation18], 1 }
0x1cad   :  { %3337 = vsyncpa [#allocation4], 1 }
0x1cae   :  { %3338 = vsyncpa [#allocation22], 1 }

</bundles_post_ra>
